<compile_context>
chip_gen: v5e
topology: v5e:2x2
jax: 0.10.0
libtpu: 0.0.40
codegen_flags: <defaults>
</compile_context>

<pallas_src>
import math

import numpy as np
import jax
import jax.numpy as jnp
from jax import lax
from jax.experimental import pallas as pl
from jax.experimental.pallas import tpu as pltpu

PAD = 0
_EPS = 1e-6
_NEG = -1e30  # additive mask value (== masked_fill(-inf) before softmax)


# ----------------------------------------------------------------------------- shared math helpers
def _ln(x, gamma, beta):
    """torch-style LayerNorm: unbiased std (N-1), sigma clamped at eps. f32 math."""
    d = x.shape[-1]
    mu = jnp.mean(x, axis=-1, keepdims=True)
    var = jnp.sum((x - mu) * (x - mu), axis=-1, keepdims=True) / (d - 1)
    sigma = jnp.maximum(jnp.sqrt(var), _EPS)
    return (x - mu) / sigma * gamma + beta


def _gelu(x):
    """erf-based GELU (exactly the module's GELU, not the tanh approximation)."""
    return x * 0.5 * (1.0 + lax.erf(x * (1.0 / math.sqrt(2.0))))


def _round_up(x, m):
    return ((x + m - 1) // m) * m


def _row_plan(r):
    """(tile, padded_rows): tile is a multiple of 8 up to 512; rows are padded to a multiple."""
    tm = min(512, _round_up(r, 8))
    return tm, _round_up(r, tm)


def _ff_chunk(dff):
    """Largest d_ff chunk <= 2048 that is either the full extent or a multiple-of-128 divisor."""
    if dff <= 2048:
        return dff
    for c in range(2048, 0, -128):
        if dff % c == 0:
            return c
    return dff


def _vmem_limit_bytes():
    try:
        cap = pltpu.get_tpu_info().vmem_capacity_bytes
    except Exception:
        cap = 64 << 20  # conservative (v7x physical)
    return int(min(cap * 3 // 4, 100 << 20))


_VMEM_LIMIT = _vmem_limit_bytes()


def _params(semantics):
    return pltpu.CompilerParams(dimension_semantics=semantics,
                                vmem_limit_bytes=_VMEM_LIMIT)


_BF16 = jnp.bfloat16


# ----------------------------------------------------------------------------- kernels
def _embed_ln_kernel(x_ref, g_ref, b_ref, o_ref):
    # LayerNorm over the pre-summed embedding slab (ebd_normal).
    o_ref[...] = _ln(x_ref[...], g_ref[...], b_ref[...])


def _mha_kernel(x_ref, mask_ref, wqkv_ref, wo_ref, g_ref, b_ref, o_ref, acc_ref):
    # Grid = (batch, head). One head per step: fused QKV projection (lane-dense (D, 3*d_k) weight,
    # 1/sqrt(d_k) pre-folded into Q), masked softmax, and direct accumulation of ctx @ wo[h] into
    # the output accumulator (no head concat). Residual + LayerNorm on the last head.
    h = pl.program_id(1)
    x = x_ref[0]                                   # (L, D) f32
    bias = mask_ref[0]                             # (1, L) additive key-padding bias

    @pl.when(h == 0)
    def _():
        acc_ref[...] = x                           # seed with the residual

    xb = x.astype(_BF16)
    d_k = wo_ref.shape[1]

    qkv = jnp.dot(xb, wqkv_ref[0], preferred_element_type=jnp.float32)   # (L, 3*d_k)
    qh = qkv[:, :d_k]
    kh = qkv[:, d_k:2 * d_k]
    vh = qkv[:, 2 * d_k:]

    s = lax.dot_general(qh.astype(_BF16), kh.astype(_BF16),
                        (((1,), (1,)), ((), ())),
                        preferred_element_type=jnp.float32)              # (L, L)
    s = s + bias
    s = s - jnp.max(s, axis=-1, keepdims=True)
    e = jnp.exp(s)
    p = e * pl.reciprocal(jnp.sum(e, axis=-1, keepdims=True), approx=True)

    ctx = jnp.dot(p.astype(_BF16), vh.astype(_BF16),
                  preferred_element_type=jnp.float32)                    # (L, d_k)
    acc_ref[...] += jnp.dot(ctx.astype(_BF16), wo_ref[0],
                            preferred_element_type=jnp.float32)          # (L, D)

    @pl.when(h == pl.num_programs(1) - 1)
    def _():
        o_ref[0] = _ln(acc_ref[...], g_ref[...], b_ref[...])


def _ffn_kernel(x_ref, w1_ref, b1_ref, w2_ref, b2_ref, g_ref, bt_ref, o_ref, acc_ref):
    # PositionWise FFN tiled over d_ff: per chunk do x@w1_chunk, GELU, accumulate h@w2_chunk.
    # Residual seeded at chunk 0; bias2 + LayerNorm applied on the last chunk.
    k = pl.program_id(1)
    x = x_ref[...]                                                        # (TM, D) f32

    @pl.when(k == 0)
    def _():
        acc_ref[...] = x

    hid = jnp.dot(x.astype(_BF16), w1_ref[...],
                  preferred_element_type=jnp.float32) + b1_ref[...]       # (TM, chunk)
    hid = _gelu(hid)
    acc_ref[...] += jnp.dot(hid.astype(_BF16), w2_ref[...],
                            preferred_element_type=jnp.float32)           # (TM, D)

    @pl.when(k == pl.num_programs(1) - 1)
    def _():
        o_ref[...] = _ln(acc_ref[...] + b2_ref[...], g_ref[...], bt_ref[...])


def _word_head_kernel(x_ref, wt_ref, bt_ref, g_ref, b_ref, o_ref):
    # word_encode = out_normal(gelu(transform(encode)))
    x = x_ref[...]
    y = jnp.dot(x.astype(_BF16), wt_ref[...],
                preferred_element_type=jnp.float32) + bt_ref[...]
    o_ref[...] = _ln(_gelu(y), g_ref[...], b_ref[...])


# ----------------------------------------------------------------------------- pallas_call wrappers
def embed_layernorm(x, gamma, beta):
    r, d = x.shape
    tm, rp = _row_plan(r)
    xp = x if rp == r else jnp.pad(x, ((0, rp - r), (0, 0)))
    row = pl.BlockSpec((tm, d), lambda i: (i, 0))
    vec = pl.BlockSpec((1, d), lambda i: (0, 0))
    out = pl.pallas_call(
        _embed_ln_kernel,
        out_shape=jax.ShapeDtypeStruct((rp, d), jnp.float32),
        grid_spec=pltpu.PrefetchScalarGridSpec(
            num_scalar_prefetch=0, grid=(rp // tm,),
            in_specs=[row, vec, vec],
            out_specs=row),
        compiler_params=_params(("parallel",)),
    )(xp, gamma, beta)
    return out[:r] if rp != r else out


def multi_head_attention(x, key_bias, wqkv, wo, gamma, beta):
    b, l, d = x.shape
    n_head, d_k = wo.shape[0], wo.shape[1]
    x_spec = pl.BlockSpec((1, l, d), lambda i, h: (i, 0, 0))
    m_spec = pl.BlockSpec((1, 1, l), lambda i, h: (i, 0, 0))
    wqkv_spec = pl.BlockSpec((1, d, 3 * d_k), lambda i, h: (h, 0, 0))
    wo_spec = pl.BlockSpec((1, d_k, d), lambda i, h: (h, 0, 0))
    vec = pl.BlockSpec((1, d), lambda i, h: (0, 0))
    return pl.pallas_call(
        _mha_kernel,
        out_shape=jax.ShapeDtypeStruct((b, l, d), jnp.float32),
        grid_spec=pltpu.PrefetchScalarGridSpec(
            num_scalar_prefetch=0, grid=(b, n_head),
            in_specs=[x_spec, m_spec, wqkv_spec, wo_spec, vec, vec],
            out_specs=x_spec,
            scratch_shapes=[pltpu.VMEM((l, d), jnp.float32)]),
        compiler_params=_params(("parallel", "arbitrary")),
    )(x, key_bias, wqkv, wo, gamma, beta)


def positionwise(x, w1, b1, w2, b2, gamma, beta):
    r, d = x.shape
    dff = w1.shape[1]
    tm, rp = _row_plan(r)
    xp = x if rp == r else jnp.pad(x, ((0, rp - r), (0, 0)))
    ck = _ff_chunk(dff)
    out = pl.pallas_call(
        _ffn_kernel,
        out_shape=jax.ShapeDtypeStruct((rp, d), jnp.float32),
        grid_spec=pltpu.PrefetchScalarGridSpec(
            num_scalar_prefetch=0, grid=(rp // tm, dff // ck),
            in_specs=[pl.BlockSpec((tm, d), lambda i, k: (i, 0)),
                      pl.BlockSpec((d, ck), lambda i, k: (0, k)),
                      pl.BlockSpec((1, ck), lambda i, k: (0, k)),
                      pl.BlockSpec((ck, d), lambda i, k: (k, 0)),
                      pl.BlockSpec((1, d), lambda i, k: (0, 0)),
                      pl.BlockSpec((1, d), lambda i, k: (0, 0)),
                      pl.BlockSpec((1, d), lambda i, k: (0, 0))],
            out_specs=pl.BlockSpec((tm, d), lambda i, k: (i, 0)),
            scratch_shapes=[pltpu.VMEM((tm, d), jnp.float32)]),
        compiler_params=_params(("parallel", "arbitrary")),
    )(xp, w1, b1, w2, b2, gamma, beta)
    return out[:r] if rp != r else out


def word_head(x, wt, bt, gamma, beta):
    r, d = x.shape
    tm, rp = _row_plan(r)
    xp = x if rp == r else jnp.pad(x, ((0, rp - r), (0, 0)))
    row = pl.BlockSpec((tm, d), lambda i: (i, 0))
    mat = pl.BlockSpec((d, d), lambda i: (0, 0))
    vec = pl.BlockSpec((1, d), lambda i: (0, 0))
    out = pl.pallas_call(
        _word_head_kernel,
        out_shape=jax.ShapeDtypeStruct((rp, d), jnp.float32),
        grid_spec=pltpu.PrefetchScalarGridSpec(
            num_scalar_prefetch=0, grid=(rp // tm,),
            in_specs=[row, mat, vec, vec, vec],
            out_specs=row),
        compiler_params=_params(("parallel",)),
    )(xp, wt, bt, gamma, beta)
    return out[:r] if rp != r else out


# ----------------------------------------------------------------------------- weight preparation
def prepare_kernel_params(params):
    """Build the kernel-facing weights: bf16 matmul operands, fused+pre-scaled QKV, per-head wo."""
    kp = {
        "enc_ebd": params["enc_ebd"], "seg_ebd": params["seg_ebd"], "pos_ebd": params["pos_ebd"],
        "ebd_gamma": params["ebd_gamma"], "ebd_beta": params["ebd_beta"],
        "out_gamma": params["out_gamma"], "out_beta": params["out_beta"],
        "wt": params["wt"].astype(_BF16), "bt": params["bt"],
        "wp": params["wp"], "bp": params["bp"],      # pooler stays in plain-JAX f32
        "layers": [],
    }
    for layer in params["layers"]:
        n_head, d_model, d_k = layer["wq"].shape
        inv_temper = 1.0 / math.sqrt(float(d_k))
        wqkv = jnp.concatenate(
            [layer["wq"] * inv_temper, layer["wk"], layer["wv"]], axis=-1)       # (H, D, 3*d_k)
        kp["layers"].append({
            "wqkv": wqkv.astype(_BF16),
            "wo": layer["wo_t"].reshape(n_head, d_k, d_model).astype(_BF16),     # (H, d_k, D)
            "mh_gamma": layer["mh_gamma"], "mh_beta": layer["mh_beta"],
            "w1": layer["w1"].astype(_BF16), "b1": layer["b1"],
            "w2": layer["w2"].astype(_BF16), "b2": layer["b2"],
            "pw_gamma": layer["pw_gamma"], "pw_beta": layer["pw_beta"],
        })
    return kp


# ----------------------------------------------------------------------------- full forward pass
def ll_model_forward(kp, inp, pos, seg):
    """Pallas port of LLModel.forward -> (word_encode, sent_encode). Dropout = identity."""
    b, s = inp.shape
    d = kp["enc_ebd"].shape[1]

    # Embedding gathers + sum fused by XLA into one slab; LayerNorm (ebd_normal) in Pallas.
    x_sum = (jnp.take(kp["enc_ebd"], inp, axis=0)
             + jnp.take(kp["seg_ebd"], seg, axis=0)
             + jnp.take(kp["pos_ebd"], pos, axis=0)).reshape(b * s, d)
    x = embed_layernorm(x_sum, kp["ebd_gamma"], kp["ebd_beta"]).reshape(b, s, d)

    # get_attn_padding_mask: key positions equal to PAD are masked for every query.
    key_bias = jnp.where(inp == PAD, _NEG, 0.0).astype(jnp.float32).reshape(b, 1, s)

    for layer in kp["layers"]:
        x = multi_head_attention(x, key_bias, layer["wqkv"], layer["wo"],
                                 layer["mh_gamma"], layer["mh_beta"])
        x = positionwise(x.reshape(b * s, d), layer["w1"], layer["b1"],
                         layer["w2"], layer["b2"],
                         layer["pw_gamma"], layer["pw_beta"]).reshape(b, s, d)

    # Pooler: one tiny (B, D) x (D, D) matmul — plain JAX (launch/DMA overhead would dominate).
    sent_encode = jnp.tanh(x[:, 0, :] @ kp["wp"] + kp["bp"])
    word_encode = word_head(x.reshape(b * s, d), kp["wt"], kp["bt"],
                            kp["out_gamma"], kp["out_beta"]).reshape(b, s, d)
    return word_encode, sent_encode


# ----------------------------------------------------------------------------- pure-JAX reference
def reference_forward(params, inp, pos, seg):
    b, s = inp.shape
    x = params["enc_ebd"][inp] + params["seg_ebd"][seg] + params["pos_ebd"][pos]
    x = _ln(x, params["ebd_gamma"], params["ebd_beta"])
    key_bias = jnp.where(inp == PAD, _NEG, 0.0).astype(jnp.float32)[:, None, :]  # (B,1,S)

    hp = jax.lax.Precision.HIGHEST
    for layer in params["layers"]:
        n_head, _, d_k = layer["wq"].shape
        q = jnp.einsum("bld,hdk->bhlk", x, layer["wq"], precision=hp)
        k = jnp.einsum("bld,hdk->bhlk", x, layer["wk"], precision=hp)
        v = jnp.einsum("bld,hdk->bhlk", x, layer["wv"], precision=hp)
        sc = jnp.einsum("bhqc,bhkc->bhqk", q, k, precision=hp) / math.sqrt(float(d_k))
        sc = sc + key_bias[:, None, :, :]
        a = jax.nn.softmax(sc, axis=-1)
        ctx = jnp.einsum("bhqk,bhkv->bhqv", a, v, precision=hp)
        ctx = jnp.transpose(ctx, (0, 2, 1, 3)).reshape(b, s, n_head * d_k)
        out = jnp.einsum("bld,de->ble", ctx, layer["wo_t"], precision=hp)
        x = _ln(out + x, layer["mh_gamma"], layer["mh_beta"])
        h = _gelu(jnp.einsum("bld,df->blf", x, layer["w1"], precision=hp) + layer["b1"])
        y = jnp.einsum("blf,fd->bld", h, layer["w2"], precision=hp) + layer["b2"]
        x = _ln(x + y, layer["pw_gamma"], layer["pw_beta"])

    sent = jnp.tanh(jnp.einsum("bd,de->be", x[:, 0, :], params["wp"], precision=hp) + params["bp"])
    w = _gelu(jnp.einsum("bld,de->ble", x, params["wt"], precision=hp) + params["bt"])
    word = _ln(w, params["out_gamma"], params["out_beta"])
    return word, sent


# ----------------------------------------------------------------------------- params & test data
def _position_table(n_position, d_model):
    pe = np.array([[p / np.power(10000, 2 * i / d_model) for i in range(d_model)]
                   for p in range(n_position)])
    pe[1:, 0::2] = np.sin(pe[1:, 0::2])
    pe[1:, 1::2] = np.sin(pe[1:, 1::2])   # (sic) the module applies sin to both halves
    return jnp.asarray(pe, dtype=jnp.float32)


def init_params(key, *, vsz, n_position, d_model, d_ff, n_head, n_layers):
    std = 0.1
    keys = iter(jax.random.split(key, 64))
    nrm = lambda shape: std * jax.random.normal(next(keys), shape, dtype=jnp.float32)
    d_k = d_model // n_head
    params = {
        "enc_ebd": nrm((vsz, d_model)),
        "seg_ebd": nrm((3, d_model)),
        "pos_ebd": _position_table(n_position, d_model),
        "ebd_gamma": 1.0 + nrm((1, d_model)), "ebd_beta": nrm((1, d_model)),
        "out_gamma": 1.0 + nrm((1, d_model)), "out_beta": nrm((1, d_model)),
        "wt": nrm((d_model, d_model)), "bt": nrm((1, d_model)),
        "wp": nrm((d_model, d_model)), "bp": nrm((1, d_model)),
        "layers": [],
    }
    for _ in range(n_layers):
        params["layers"].append({
            "wq": nrm((n_head, d_model, d_k)),
            "wk": nrm((n_head, d_model, d_k)),
            "wv": nrm((n_head, d_model, d_k)),
            "wo_t": nrm((d_model, d_model)),        # already transposed: out = ctx @ wo_t
            "mh_gamma": 1.0 + nrm((1, d_model)), "mh_beta": nrm((1, d_model)),
            "w1": nrm((d_model, d_ff)), "b1": nrm((1, d_ff)),
            "w2": nrm((d_ff, d_model)), "b2": nrm((1, d_model)),
            "pw_gamma": 1.0 + nrm((1, d_model)), "pw_beta": nrm((1, d_model)),
        })
    return params


if __name__ == "__main__":
    B, S = 2, 8
    VSZ, D_MODEL, D_FF, N_HEAD, N_LAYERS = 50, 32, 64, 4, 2
    MAX_LEN = S

    key = jax.random.PRNGKey(0)
    kp, ki, ks = jax.random.split(key, 3)
    params = init_params(kp, vsz=VSZ, n_position=MAX_LEN + 1, d_model=D_MODEL,
                         d_ff=D_FF, n_head=N_HEAD, n_layers=N_LAYERS)
    kernel_params = prepare_kernel_params(params)

    inp = jax.random.randint(ki, (B, S), 1, VSZ, dtype=jnp.int32)
    inp = inp.at[:, -2:].set(PAD)                                   # padded tail tokens
    pos = jnp.where(inp != PAD, jnp.arange(1, S + 1, dtype=jnp.int32)[None, :], 0)
    seg = jax.random.randint(ks, (B, S), 0, 3, dtype=jnp.int32)

    fwd = jax.jit(ll_model_forward)
    word, sent = fwd(kernel_params, inp, pos, seg)
    jax.block_until_ready((word, sent))

    ref_word, ref_sent = reference_forward(params, inp, pos, seg)
    err_w = float(jnp.max(jnp.abs(word - ref_word)))
    err_s = float(jnp.max(jnp.abs(sent - ref_sent)))
    assert jnp.allclose(word, ref_word, rtol=2e-2, atol=2e-2), ("word_encode mismatch", err_w)
    assert jnp.allclose(sent, ref_sent, rtol=2e-2, atol=2e-2), ("sent_encode mismatch", err_s)

    print("KERNEL_OK")
</pallas_src>

<mosaic_0001>
module attributes {stable_mosaic.version = 11 : i64} {
  func.func @_embed_ln_kernel(%arg0: i32, %arg1: memref<16x32xf32, #tpu.memory_space<vmem>>, %arg2: memref<1x32xf32, #tpu.memory_space<vmem>>, %arg3: memref<1x32xf32, #tpu.memory_space<vmem>>, %arg4: memref<16x32xf32, #tpu.memory_space<vmem>>) attributes {dimension_semantics = [#tpu.dimension_semantics<parallel>], iteration_bounds = array<i64: 1>, scalar_prefetch = 0 : i64, scratch_operands = 0 : i64, tpu.core_type = #tpu.core_type<tc>, window_params = [{transform_indices = @transform_0, window_bounds = array<i64: 16, 32>}, {pipeline_mode = #tpu.pipeline_mode<synchronous>, transform_indices = @transform_1, window_bounds = array<i64: 1, 32>}, {pipeline_mode = #tpu.pipeline_mode<synchronous>, transform_indices = @transform_2, window_bounds = array<i64: 1, 32>}, {transform_indices = @transform_3, window_bounds = array<i64: 16, 32>}]} {
    %c0 = arith.constant 0 : index
    %c0_0 = arith.constant 0 : index
    %0 = vector.load %arg1[%c0, %c0_0] : memref<16x32xf32, #tpu.memory_space<vmem>>, vector<16x32xf32>
    %c0_1 = arith.constant 0 : index
    %c0_2 = arith.constant 0 : index
    %1 = vector.load %arg2[%c0_1, %c0_2] : memref<1x32xf32, #tpu.memory_space<vmem>>, vector<1x32xf32>
    %c0_3 = arith.constant 0 : index
    %c0_4 = arith.constant 0 : index
    %2 = vector.load %arg3[%c0_3, %c0_4] : memref<1x32xf32, #tpu.memory_space<vmem>>, vector<1x32xf32>
    %cst = arith.constant dense<0.000000e+00> : vector<16xf32>
    %3 = vector.multi_reduction <add>, %0, %cst [1] : vector<16x32xf32> to vector<16xf32>
    %4 = vector.shape_cast %3 : vector<16xf32> to vector<16x1xf32>
    %cst_5 = arith.constant 3.200000e+01 : f32
    %5 = vector.broadcast %cst_5 : f32 to vector<16x1xf32>
    %6 = arith.divf %4, %5 : vector<16x1xf32>
    %7 = vector.broadcast %6 : vector<16x1xf32> to vector<16x32xf32>
    %8 = arith.subf %0, %7 : vector<16x32xf32>
    %9 = vector.broadcast %6 : vector<16x1xf32> to vector<16x32xf32>
    %10 = arith.subf %0, %9 : vector<16x32xf32>
    %11 = arith.mulf %8, %10 : vector<16x32xf32>
    %cst_6 = arith.constant dense<0.000000e+00> : vector<16xf32>
    %12 = vector.multi_reduction <add>, %11, %cst_6 [1] : vector<16x32xf32> to vector<16xf32>
    %13 = vector.shape_cast %12 : vector<16xf32> to vector<16x1xf32>
    %cst_7 = arith.constant 3.100000e+01 : f32
    %14 = vector.broadcast %cst_7 : f32 to vector<16x1xf32>
    %15 = arith.divf %13, %14 : vector<16x1xf32>
    %16 = math.sqrt %15 : vector<16x1xf32>
    %cst_8 = arith.constant 9.99999997E-7 : f32
    %17 = vector.broadcast %cst_8 : f32 to vector<16x1xf32>
    %18 = arith.maximumf %16, %17 : vector<16x1xf32>
    %19 = vector.broadcast %6 : vector<16x1xf32> to vector<16x32xf32>
    %20 = arith.subf %0, %19 : vector<16x32xf32>
    %21 = vector.broadcast %18 : vector<16x1xf32> to vector<16x32xf32>
    %22 = arith.divf %20, %21 : vector<16x32xf32>
    %23 = vector.broadcast %1 : vector<1x32xf32> to vector<16x32xf32>
    %24 = arith.mulf %22, %23 : vector<16x32xf32>
    %25 = vector.broadcast %2 : vector<1x32xf32> to vector<16x32xf32>
    %26 = arith.addf %24, %25 : vector<16x32xf32>
    %c0_9 = arith.constant 0 : index
    %c0_10 = arith.constant 0 : index
    %27 = vector.load %arg4[%c0_9, %c0_10] : memref<16x32xf32, #tpu.memory_space<vmem>>, vector<16x32xf32>
    tpu.vector_store %arg4[%c0_9, %c0_10], %26 {strides = array<i32>} : memref<16x32xf32, #tpu.memory_space<vmem>>, vector<16x32xf32>,
    return
  }
  func.func @transform_0(%arg0: i32) -> (i32, i32) {
    %c0_i32 = arith.constant 0 : i32
    %c0_i32_0 = arith.constant 0 : i32
    return %arg0, %c0_i32 : i32, i32
  }
  func.func @transform_1(%arg0: i32) -> (i32, i32) {
    %c0_i32 = arith.constant 0 : i32
    %c0_i32_0 = arith.constant 0 : i32
    %c0_i32_1 = arith.constant 0 : i32
    return %c0_i32, %c0_i32_0 : i32, i32
  }
  func.func @transform_2(%arg0: i32) -> (i32, i32) {
    %c0_i32 = arith.constant 0 : i32
    %c0_i32_0 = arith.constant 0 : i32
    %c0_i32_1 = arith.constant 0 : i32
    return %c0_i32, %c0_i32_0 : i32, i32
  }
  func.func @transform_3(%arg0: i32) -> (i32, i32) {
    %c0_i32 = arith.constant 0 : i32
    %c0_i32_0 = arith.constant 0 : i32
    return %arg0, %c0_i32 : i32, i32
  }
}

module attributes {stable_mosaic.version = 11 : i64} {
  func.func @_mha_kernel(%arg0: i32, %arg1: i32, %arg2: memref<1x8x32xf32, #tpu.memory_space<vmem>>, %arg3: memref<1x1x8xf32, #tpu.memory_space<vmem>>, %arg4: memref<1x32x24xbf16, #tpu.memory_space<vmem>>, %arg5: memref<1x8x32xbf16, #tpu.memory_space<vmem>>, %arg6: memref<1x32xf32, #tpu.memory_space<vmem>>, %arg7: memref<1x32xf32, #tpu.memory_space<vmem>>, %arg8: memref<1x8x32xf32, #tpu.memory_space<vmem>>, %arg9: memref<8x32xf32, #tpu.memory_space<vmem>>) attributes {dimension_semantics = [#tpu.dimension_semantics<parallel>, #tpu.dimension_semantics<arbitrary>], iteration_bounds = array<i64: 2, 4>, scalar_prefetch = 0 : i64, scratch_operands = 1 : i64, tpu.core_type = #tpu.core_type<tc>, window_params = [{transform_indices = @transform_0, window_bounds = array<i64: 1, 8, 32>}, {transform_indices = @transform_1, window_bounds = array<i64: 1, 1, 8>}, {transform_indices = @transform_2, window_bounds = array<i64: 1, 32, 24>}, {transform_indices = @transform_3, window_bounds = array<i64: 1, 8, 32>}, {pipeline_mode = #tpu.pipeline_mode<synchronous>, transform_indices = @transform_4, window_bounds = array<i64: 1, 32>}, {pipeline_mode = #tpu.pipeline_mode<synchronous>, transform_indices = @transform_5, window_bounds = array<i64: 1, 32>}, {transform_indices = @transform_6, window_bounds = array<i64: 1, 8, 32>}]} {
    %c0 = arith.constant 0 : index
    %c0_0 = arith.constant 0 : index
    %c0_1 = arith.constant 0 : index
    %0 = vector.load %arg2[%c0, %c0_0, %c0_1] : memref<1x8x32xf32, #tpu.memory_space<vmem>>, vector<1x8x32xf32>
    %1 = vector.shape_cast %0 : vector<1x8x32xf32> to vector<8x32xf32>
    %c0_2 = arith.constant 0 : index
    %c0_3 = arith.constant 0 : index
    %c0_4 = arith.constant 0 : index
    %2 = vector.load %arg3[%c0_2, %c0_3, %c0_4] : memref<1x1x8xf32, #tpu.memory_space<vmem>>, vector<1x1x8xf32>
    %3 = vector.shape_cast %2 : vector<1x1x8xf32> to vector<1x8xf32>
    %c0_i32 = arith.constant 0 : i32
    %4 = arith.cmpi eq, %arg1, %c0_i32 : i32
    %5 = arith.extui %4 : i1 to i32
    %c0_i32_5 = arith.constant 0 : i32
    %6 = arith.cmpi ne, %5, %c0_i32_5 : i32
    scf.if %6 {
      %c0_22 = arith.constant 0 : index
      %c0_23 = arith.constant 0 : index
      %42 = vector.load %arg9[%c0_22, %c0_23] : memref<8x32xf32, #tpu.memory_space<vmem>>, vector<8x32xf32>
      tpu.vector_store %arg9[%c0_22, %c0_23], %1 {strides = array<i32>} : memref<8x32xf32, #tpu.memory_space<vmem>>, vector<8x32xf32>,
    } else {
    }
    %7 = arith.truncf %1 : vector<8x32xf32> to vector<8x32xbf16>
    %c0_6 = arith.constant 0 : index
    %c0_7 = arith.constant 0 : index
    %c0_8 = arith.constant 0 : index
    %8 = vector.load %arg4[%c0_6, %c0_7, %c0_8] : memref<1x32x24xbf16, #tpu.memory_space<vmem>>, vector<1x32x24xbf16>
    %9 = vector.shape_cast %8 : vector<1x32x24xbf16> to vector<32x24xbf16>
    %cst = arith.constant dense<0.000000e+00> : vector<8x24xf32>
    %10 = tpu.matmul %7, %9, %cst {dimension_numbers = #tpu.dot_dimension_numbers<[1], [0], [0], [1], [0, 0, 1, 1], [], []>} : vector<8x32xbf16>, vector<32x24xbf16>, vector<8x24xf32> -> vector<8x24xf32>
    %11 = vector.extract_strided_slice %10 {offsets = [0, 0], sizes = [8, 8], strides = [1, 1]} : vector<8x24xf32> to vector<8x8xf32>
    %12 = vector.extract_strided_slice %10 {offsets = [0, 8], sizes = [8, 8], strides = [1, 1]} : vector<8x24xf32> to vector<8x8xf32>
    %13 = vector.extract_strided_slice %10 {offsets = [0, 16], sizes = [8, 8], strides = [1, 1]} : vector<8x24xf32> to vector<8x8xf32>
    %14 = arith.truncf %11 : vector<8x8xf32> to vector<8x8xbf16>
    %15 = arith.truncf %12 : vector<8x8xf32> to vector<8x8xbf16>
    %cst_9 = arith.constant dense<0.000000e+00> : vector<8x8xf32>
    %16 = tpu.matmul %14, %15, %cst_9 {dimension_numbers = #tpu.dot_dimension_numbers<[1], [1], [0], [0], [0, 0, 1, 0], [], []>} : vector<8x8xbf16>, vector<8x8xbf16>, vector<8x8xf32> -> vector<8x8xf32>
    %17 = vector.broadcast %3 : vector<1x8xf32> to vector<8x8xf32>
    %18 = arith.addf %16, %17 : vector<8x8xf32>
    %cst_10 = arith.constant dense<0xFF800000> : vector<8xf32>
    %19 = vector.multi_reduction <maximumf>, %18, %cst_10 [1] : vector<8x8xf32> to vector<8xf32>
    %20 = vector.shape_cast %19 : vector<8xf32> to vector<8x1xf32>
    %21 = vector.broadcast %20 : vector<8x1xf32> to vector<8x8xf32>
    %22 = arith.subf %18, %21 : vector<8x8xf32>
    %23 = math.exp %22 : vector<8x8xf32>
    %cst_11 = arith.constant dense<0.000000e+00> : vector<8xf32>
    %24 = vector.multi_reduction <add>, %23, %cst_11 [1] : vector<8x8xf32> to vector<8xf32>
    %25 = vector.shape_cast %24 : vector<8xf32> to vector<8x1xf32>
    %26 = tpu.reciprocal %25 {approx = true} : vector<8x1xf32> -> vector<8x1xf32>
    %27 = vector.broadcast %26 : vector<8x1xf32> to vector<8x8xf32>
    %28 = arith.mulf %23, %27 : vector<8x8xf32>
    %29 = arith.truncf %28 : vector<8x8xf32> to vector<8x8xbf16>
    %30 = arith.truncf %13 : vector<8x8xf32> to vector<8x8xbf16>
    %cst_12 = arith.constant dense<0.000000e+00> : vector<8x8xf32>
    %31 = tpu.matmul %29, %30, %cst_12 {dimension_numbers = #tpu.dot_dimension_numbers<[1], [0], [0], [1], [0, 0, 1, 1], [], []>} : vector<8x8xbf16>, vector<8x8xbf16>, vector<8x8xf32> -> vector<8x8xf32>
    %c0_13 = arith.constant 0 : index
    %c0_14 = arith.constant 0 : index
    %32 = vector.load %arg9[%c0_13, %c0_14] : memref<8x32xf32, #tpu.memory_space<vmem>>, vector<8x32xf32>
    %33 = arith.truncf %31 : vector<8x8xf32> to vector<8x8xbf16>
    %c0_15 = arith.constant 0 : index
    %c0_16 = arith.constant 0 : index
    %c0_17 = arith.constant 0 : index
    %34 = vector.load %arg5[%c0_15, %c0_16, %c0_17] : memref<1x8x32xbf16, #tpu.memory_space<vmem>>, vector<1x8x32xbf16>
    %35 = vector.shape_cast %34 : vector<1x8x32xbf16> to vector<8x32xbf16>
    %cst_18 = arith.constant dense<0.000000e+00> : vector<8x32xf32>
    %36 = tpu.matmul %33, %35, %cst_18 {dimension_numbers = #tpu.dot_dimension_numbers<[1], [0], [0], [1], [0, 0, 1, 1], [], []>} : vector<8x8xbf16>, vector<8x32xbf16>, vector<8x32xf32> -> vector<8x32xf32>
    %37 = arith.addf %32, %36 : vector<8x32xf32>
    %c0_19 = arith.constant 0 : index
    %c0_20 = arith.constant 0 : index
    %38 = vector.load %arg9[%c0_19, %c0_20] : memref<8x32xf32, #tpu.memory_space<vmem>>, vector<8x32xf32>
    tpu.vector_store %arg9[%c0_19, %c0_20], %37 {strides = array<i32>} : memref<8x32xf32, #tpu.memory_space<vmem>>, vector<8x32xf32>,
    %c3_i32 = arith.constant 3 : i32
    %39 = arith.cmpi eq, %arg1, %c3_i32 : i32
    %40 = arith.extui %39 : i1 to i32
    %c0_i32_21 = arith.constant 0 : i32
    %41 = arith.cmpi ne, %40, %c0_i32_21 : i32
    scf.if %41 {
      %c0_22 = arith.constant 0 : index
      %c0_23 = arith.constant 0 : index
      %42 = vector.load %arg9[%c0_22, %c0_23] : memref<8x32xf32, #tpu.memory_space<vmem>>, vector<8x32xf32>
      %c0_24 = arith.constant 0 : index
      %c0_25 = arith.constant 0 : index
      %43 = vector.load %arg6[%c0_24, %c0_25] : memref<1x32xf32, #tpu.memory_space<vmem>>, vector<1x32xf32>
      %c0_26 = arith.constant 0 : index
      %c0_27 = arith.constant 0 : index
      %44 = vector.load %arg7[%c0_26, %c0_27] : memref<1x32xf32, #tpu.memory_space<vmem>>, vector<1x32xf32>
      %cst_28 = arith.constant dense<0.000000e+00> : vector<8xf32>
      %45 = vector.multi_reduction <add>, %42, %cst_28 [1] : vector<8x32xf32> to vector<8xf32>
      %46 = vector.shape_cast %45 : vector<8xf32> to vector<8x1xf32>
      %cst_29 = arith.constant 3.200000e+01 : f32
      %47 = vector.broadcast %cst_29 : f32 to vector<8x1xf32>
      %48 = arith.divf %46, %47 : vector<8x1xf32>
      %49 = vector.broadcast %48 : vector<8x1xf32> to vector<8x32xf32>
      %50 = arith.subf %42, %49 : vector<8x32xf32>
      %51 = vector.broadcast %48 : vector<8x1xf32> to vector<8x32xf32>
      %52 = arith.subf %42, %51 : vector<8x32xf32>
      %53 = arith.mulf %50, %52 : vector<8x32xf32>
      %cst_30 = arith.constant dense<0.000000e+00> : vector<8xf32>
      %54 = vector.multi_reduction <add>, %53, %cst_30 [1] : vector<8x32xf32> to vector<8xf32>
      %55 = vector.shape_cast %54 : vector<8xf32> to vector<8x1xf32>
      %cst_31 = arith.constant 3.100000e+01 : f32
      %56 = vector.broadcast %cst_31 : f32 to vector<8x1xf32>
      %57 = arith.divf %55, %56 : vector<8x1xf32>
      %58 = math.sqrt %57 : vector<8x1xf32>
      %cst_32 = arith.constant 9.99999997E-7 : f32
      %59 = vector.broadcast %cst_32 : f32 to vector<8x1xf32>
      %60 = arith.maximumf %58, %59 : vector<8x1xf32>
      %61 = vector.broadcast %48 : vector<8x1xf32> to vector<8x32xf32>
      %62 = arith.subf %42, %61 : vector<8x32xf32>
      %63 = vector.broadcast %60 : vector<8x1xf32> to vector<8x32xf32>
      %64 = arith.divf %62, %63 : vector<8x32xf32>
      %65 = vector.broadcast %43 : vector<1x32xf32> to vector<8x32xf32>
      %66 = arith.mulf %64, %65 : vector<8x32xf32>
      %67 = vector.broadcast %44 : vector<1x32xf32> to vector<8x32xf32>
      %68 = arith.addf %66, %67 : vector<8x32xf32>
      %c0_33 = arith.constant 0 : index
      %c0_34 = arith.constant 0 : index
      %c0_35 = arith.constant 0 : index
      %69 = vector.load %arg8[%c0_33, %c0_34, %c0_35] : memref<1x8x32xf32, #tpu.memory_space<vmem>>, vector<1x8x32xf32>
      %70 = vector.shape_cast %69 : vector<1x8x32xf32> to vector<8x32xf32>
      %71 = vector.shape_cast %68 : vector<8x32xf32> to vector<1x8x32xf32>
      tpu.vector_store %arg8[%c0_33, %c0_34, %c0_35], %71 {strides = array<i32>} : memref<1x8x32xf32, #tpu.memory_space<vmem>>, vector<1x8x32xf32>,
    } else {
    }
    return
  }
  func.func @transform_0(%arg0: i32, %arg1: i32) -> (i32, i32, i32) {
    %c0_i32 = arith.constant 0 : i32
    %c0_i32_0 = arith.constant 0 : i32
    %c0_i32_1 = arith.constant 0 : i32
    return %arg0, %c0_i32, %c0_i32_0 : i32, i32, i32
  }
  func.func @transform_1(%arg0: i32, %arg1: i32) -> (i32, i32, i32) {
    %c0_i32 = arith.constant 0 : i32
    %c0_i32_0 = arith.constant 0 : i32
    %c0_i32_1 = arith.constant 0 : i32
    return %arg0, %c0_i32, %c0_i32_0 : i32, i32, i32
  }
  func.func @transform_2(%arg0: i32, %arg1: i32) -> (i32, i32, i32) {
    %c0_i32 = arith.constant 0 : i32
    %c0_i32_0 = arith.constant 0 : i32
    %c0_i32_1 = arith.constant 0 : i32
    return %arg1, %c0_i32, %c0_i32_0 : i32, i32, i32
  }
  func.func @transform_3(%arg0: i32, %arg1: i32) -> (i32, i32, i32) {
    %c0_i32 = arith.constant 0 : i32
    %c0_i32_0 = arith.constant 0 : i32
    %c0_i32_1 = arith.constant 0 : i32
    return %arg1, %c0_i32, %c0_i32_0 : i32, i32, i32
  }
  func.func @transform_4(%arg0: i32, %arg1: i32) -> (i32, i32) {
    %c0_i32 = arith.constant 0 : i32
    %c0_i32_0 = arith.constant 0 : i32
    %c0_i32_1 = arith.constant 0 : i32
    return %c0_i32, %c0_i32_0 : i32, i32
  }
  func.func @transform_5(%arg0: i32, %arg1: i32) -> (i32, i32) {
    %c0_i32 = arith.constant 0 : i32
    %c0_i32_0 = arith.constant 0 : i32
    %c0_i32_1 = arith.constant 0 : i32
    return %c0_i32, %c0_i32_0 : i32, i32
  }
  func.func @transform_6(%arg0: i32, %arg1: i32) -> (i32, i32, i32) {
    %c0_i32 = arith.constant 0 : i32
    %c0_i32_0 = arith.constant 0 : i32
    %c0_i32_1 = arith.constant 0 : i32
    return %arg0, %c0_i32, %c0_i32_0 : i32, i32, i32
  }
}

module attributes {stable_mosaic.version = 11 : i64} {
  func.func @_ffn_kernel(%arg0: i32, %arg1: i32, %arg2: memref<16x32xf32, #tpu.memory_space<vmem>>, %arg3: memref<32x64xbf16, #tpu.memory_space<vmem>>, %arg4: memref<1x64xf32, #tpu.memory_space<vmem>>, %arg5: memref<64x32xbf16, #tpu.memory_space<vmem>>, %arg6: memref<1x32xf32, #tpu.memory_space<vmem>>, %arg7: memref<1x32xf32, #tpu.memory_space<vmem>>, %arg8: memref<1x32xf32, #tpu.memory_space<vmem>>, %arg9: memref<16x32xf32, #tpu.memory_space<vmem>>, %arg10: memref<16x32xf32, #tpu.memory_space<vmem>>) attributes {dimension_semantics = [#tpu.dimension_semantics<parallel>, #tpu.dimension_semantics<arbitrary>], iteration_bounds = array<i64: 1, 1>, scalar_prefetch = 0 : i64, scratch_operands = 1 : i64, tpu.core_type = #tpu.core_type<tc>, window_params = [{transform_indices = @transform_0, window_bounds = array<i64: 16, 32>}, {transform_indices = @transform_1, window_bounds = array<i64: 32, 64>}, {transform_indices = @transform_2, window_bounds = array<i64: 1, 64>}, {transform_indices = @transform_3, window_bounds = array<i64: 64, 32>}, {pipeline_mode = #tpu.pipeline_mode<synchronous>, transform_indices = @transform_4, window_bounds = array<i64: 1, 32>}, {pipeline_mode = #tpu.pipeline_mode<synchronous>, transform_indices = @transform_5, window_bounds = array<i64: 1, 32>}, {pipeline_mode = #tpu.pipeline_mode<synchronous>, transform_indices = @transform_6, window_bounds = array<i64: 1, 32>}, {transform_indices = @transform_7, window_bounds = array<i64: 16, 32>}]} {
    %c0 = arith.constant 0 : index
    %c0_0 = arith.constant 0 : index
    %0 = vector.load %arg2[%c0, %c0_0] : memref<16x32xf32, #tpu.memory_space<vmem>>, vector<16x32xf32>
    %c0_i32 = arith.constant 0 : i32
    %1 = arith.cmpi eq, %arg1, %c0_i32 : i32
    %2 = arith.extui %1 : i1 to i32
    %c0_i32_1 = arith.constant 0 : i32
    %3 = arith.cmpi ne, %2, %c0_i32_1 : i32
    scf.if %3 {
      %c0_18 = arith.constant 0 : index
      %c0_19 = arith.constant 0 : index
      %27 = vector.load %arg10[%c0_18, %c0_19] : memref<16x32xf32, #tpu.memory_space<vmem>>, vector<16x32xf32>
      tpu.vector_store %arg10[%c0_18, %c0_19], %0 {strides = array<i32>} : memref<16x32xf32, #tpu.memory_space<vmem>>, vector<16x32xf32>,
    } else {
    }
    %4 = arith.truncf %0 : vector<16x32xf32> to vector<16x32xbf16>
    %c0_2 = arith.constant 0 : index
    %c0_3 = arith.constant 0 : index
    %5 = vector.load %arg3[%c0_2, %c0_3] : memref<32x64xbf16, #tpu.memory_space<vmem>>, vector<32x64xbf16>
    %cst = arith.constant dense<0.000000e+00> : vector<16x64xf32>
    %6 = tpu.matmul %4, %5, %cst {dimension_numbers = #tpu.dot_dimension_numbers<[1], [0], [0], [1], [0, 0, 1, 1], [], []>} : vector<16x32xbf16>, vector<32x64xbf16>, vector<16x64xf32> -> vector<16x64xf32>
    %c0_4 = arith.constant 0 : index
    %c0_5 = arith.constant 0 : index
    %7 = vector.load %arg4[%c0_4, %c0_5] : memref<1x64xf32, #tpu.memory_space<vmem>>, vector<1x64xf32>
    %8 = vector.broadcast %7 : vector<1x64xf32> to vector<16x64xf32>
    %9 = arith.addf %6, %8 : vector<16x64xf32>
    %cst_6 = arith.constant 5.000000e-01 : f32
    %10 = vector.broadcast %cst_6 : f32 to vector<16x64xf32>
    %11 = arith.mulf %9, %10 : vector<16x64xf32>
    %cst_7 = arith.constant 0.707106769 : f32
    %12 = vector.broadcast %cst_7 : f32 to vector<16x64xf32>
    %13 = arith.mulf %9, %12 : vector<16x64xf32>
    %14 = math.erf %13 : vector<16x64xf32>
    %cst_8 = arith.constant 1.000000e+00 : f32
    %15 = vector.broadcast %cst_8 : f32 to vector<16x64xf32>
    %16 = arith.addf %15, %14 : vector<16x64xf32>
    %17 = arith.mulf %11, %16 : vector<16x64xf32>
    %c0_9 = arith.constant 0 : index
    %c0_10 = arith.constant 0 : index
    %18 = vector.load %arg10[%c0_9, %c0_10] : memref<16x32xf32, #tpu.memory_space<vmem>>, vector<16x32xf32>
    %19 = arith.truncf %17 : vector<16x64xf32> to vector<16x64xbf16>
    %c0_11 = arith.constant 0 : index
    %c0_12 = arith.constant 0 : index
    %20 = vector.load %arg5[%c0_11, %c0_12] : memref<64x32xbf16, #tpu.memory_space<vmem>>, vector<64x32xbf16>
    %cst_13 = arith.constant dense<0.000000e+00> : vector<16x32xf32>
    %21 = tpu.matmul %19, %20, %cst_13 {dimension_numbers = #tpu.dot_dimension_numbers<[1], [0], [0], [1], [0, 0, 1, 1], [], []>} : vector<16x64xbf16>, vector<64x32xbf16>, vector<16x32xf32> -> vector<16x32xf32>
    %22 = arith.addf %18, %21 : vector<16x32xf32>
    %c0_14 = arith.constant 0 : index
    %c0_15 = arith.constant 0 : index
    %23 = vector.load %arg10[%c0_14, %c0_15] : memref<16x32xf32, #tpu.memory_space<vmem>>, vector<16x32xf32>
    tpu.vector_store %arg10[%c0_14, %c0_15], %22 {strides = array<i32>} : memref<16x32xf32, #tpu.memory_space<vmem>>, vector<16x32xf32>,
    %c0_i32_16 = arith.constant 0 : i32
    %24 = arith.cmpi eq, %arg1, %c0_i32_16 : i32
    %25 = arith.extui %24 : i1 to i32
    %c0_i32_17 = arith.constant 0 : i32
    %26 = arith.cmpi ne, %25, %c0_i32_17 : i32
    scf.if %26 {
      %c0_18 = arith.constant 0 : index
      %c0_19 = arith.constant 0 : index
      %27 = vector.load %arg10[%c0_18, %c0_19] : memref<16x32xf32, #tpu.memory_space<vmem>>, vector<16x32xf32>
      %c0_20 = arith.constant 0 : index
      %c0_21 = arith.constant 0 : index
      %28 = vector.load %arg6[%c0_20, %c0_21] : memref<1x32xf32, #tpu.memory_space<vmem>>, vector<1x32xf32>
      %29 = vector.broadcast %28 : vector<1x32xf32> to vector<16x32xf32>
      %30 = arith.addf %27, %29 : vector<16x32xf32>
      %c0_22 = arith.constant 0 : index
      %c0_23 = arith.constant 0 : index
      %31 = vector.load %arg7[%c0_22, %c0_23] : memref<1x32xf32, #tpu.memory_space<vmem>>, vector<1x32xf32>
      %c0_24 = arith.constant 0 : index
      %c0_25 = arith.constant 0 : index
      %32 = vector.load %arg8[%c0_24, %c0_25] : memref<1x32xf32, #tpu.memory_space<vmem>>, vector<1x32xf32>
      %cst_26 = arith.constant dense<0.000000e+00> : vector<16xf32>
      %33 = vector.multi_reduction <add>, %30, %cst_26 [1] : vector<16x32xf32> to vector<16xf32>
      %34 = vector.shape_cast %33 : vector<16xf32> to vector<16x1xf32>
      %cst_27 = arith.constant 3.200000e+01 : f32
      %35 = vector.broadcast %cst_27 : f32 to vector<16x1xf32>
      %36 = arith.divf %34, %35 : vector<16x1xf32>
      %37 = vector.broadcast %36 : vector<16x1xf32> to vector<16x32xf32>
      %38 = arith.subf %30, %37 : vector<16x32xf32>
      %39 = vector.broadcast %36 : vector<16x1xf32> to vector<16x32xf32>
      %40 = arith.subf %30, %39 : vector<16x32xf32>
      %41 = arith.mulf %38, %40 : vector<16x32xf32>
      %cst_28 = arith.constant dense<0.000000e+00> : vector<16xf32>
      %42 = vector.multi_reduction <add>, %41, %cst_28 [1] : vector<16x32xf32> to vector<16xf32>
      %43 = vector.shape_cast %42 : vector<16xf32> to vector<16x1xf32>
      %cst_29 = arith.constant 3.100000e+01 : f32
      %44 = vector.broadcast %cst_29 : f32 to vector<16x1xf32>
      %45 = arith.divf %43, %44 : vector<16x1xf32>
      %46 = math.sqrt %45 : vector<16x1xf32>
      %cst_30 = arith.constant 9.99999997E-7 : f32
      %47 = vector.broadcast %cst_30 : f32 to vector<16x1xf32>
      %48 = arith.maximumf %46, %47 : vector<16x1xf32>
      %49 = vector.broadcast %36 : vector<16x1xf32> to vector<16x32xf32>
      %50 = arith.subf %30, %49 : vector<16x32xf32>
      %51 = vector.broadcast %48 : vector<16x1xf32> to vector<16x32xf32>
      %52 = arith.divf %50, %51 : vector<16x32xf32>
      %53 = vector.broadcast %31 : vector<1x32xf32> to vector<16x32xf32>
      %54 = arith.mulf %52, %53 : vector<16x32xf32>
      %55 = vector.broadcast %32 : vector<1x32xf32> to vector<16x32xf32>
      %56 = arith.addf %54, %55 : vector<16x32xf32>
      %c0_31 = arith.constant 0 : index
      %c0_32 = arith.constant 0 : index
      %57 = vector.load %arg9[%c0_31, %c0_32] : memref<16x32xf32, #tpu.memory_space<vmem>>, vector<16x32xf32>
      tpu.vector_store %arg9[%c0_31, %c0_32], %56 {strides = array<i32>} : memref<16x32xf32, #tpu.memory_space<vmem>>, vector<16x32xf32>,
    } else {
    }
    return
  }
  func.func @transform_0(%arg0: i32, %arg1: i32) -> (i32, i32) {
    %c0_i32 = arith.constant 0 : i32
    %c0_i32_0 = arith.constant 0 : i32
    return %arg0, %c0_i32 : i32, i32
  }
  func.func @transform_1(%arg0: i32, %arg1: i32) -> (i32, i32) {
    %c0_i32 = arith.constant 0 : i32
    %c0_i32_0 = arith.constant 0 : i32
    return %c0_i32, %arg1 : i32, i32
  }
  func.func @transform_2(%arg0: i32, %arg1: i32) -> (i32, i32) {
    %c0_i32 = arith.constant 0 : i32
    %c0_i32_0 = arith.constant 0 : i32
    return %c0_i32, %arg1 : i32, i32
  }
  func.func @transform_3(%arg0: i32, %arg1: i32) -> (i32, i32) {
    %c0_i32 = arith.constant 0 : i32
    %c0_i32_0 = arith.constant 0 : i32
    return %arg1, %c0_i32 : i32, i32
  }
  func.func @transform_4(%arg0: i32, %arg1: i32) -> (i32, i32) {
    %c0_i32 = arith.constant 0 : i32
    %c0_i32_0 = arith.constant 0 : i32
    %c0_i32_1 = arith.constant 0 : i32
    return %c0_i32, %c0_i32_0 : i32, i32
  }
  func.func @transform_5(%arg0: i32, %arg1: i32) -> (i32, i32) {
    %c0_i32 = arith.constant 0 : i32
    %c0_i32_0 = arith.constant 0 : i32
    %c0_i32_1 = arith.constant 0 : i32
    return %c0_i32, %c0_i32_0 : i32, i32
  }
  func.func @transform_6(%arg0: i32, %arg1: i32) -> (i32, i32) {
    %c0_i32 = arith.constant 0 : i32
    %c0_i32_0 = arith.constant 0 : i32
    %c0_i32_1 = arith.constant 0 : i32
    return %c0_i32, %c0_i32_0 : i32, i32
  }
  func.func @transform_7(%arg0: i32, %arg1: i32) -> (i32, i32) {
    %c0_i32 = arith.constant 0 : i32
    %c0_i32_0 = arith.constant 0 : i32
    return %arg0, %c0_i32 : i32, i32
  }
}

module attributes {stable_mosaic.version = 11 : i64} {
  func.func @_word_head_kernel(%arg0: i32, %arg1: memref<16x32xf32, #tpu.memory_space<vmem>>, %arg2: memref<32x32xbf16, #tpu.memory_space<vmem>>, %arg3: memref<1x32xf32, #tpu.memory_space<vmem>>, %arg4: memref<1x32xf32, #tpu.memory_space<vmem>>, %arg5: memref<1x32xf32, #tpu.memory_space<vmem>>, %arg6: memref<16x32xf32, #tpu.memory_space<vmem>>) attributes {dimension_semantics = [#tpu.dimension_semantics<parallel>], iteration_bounds = array<i64: 1>, scalar_prefetch = 0 : i64, scratch_operands = 0 : i64, tpu.core_type = #tpu.core_type<tc>, window_params = [{transform_indices = @transform_0, window_bounds = array<i64: 16, 32>}, {pipeline_mode = #tpu.pipeline_mode<synchronous>, transform_indices = @transform_1, window_bounds = array<i64: 32, 32>}, {pipeline_mode = #tpu.pipeline_mode<synchronous>, transform_indices = @transform_2, window_bounds = array<i64: 1, 32>}, {pipeline_mode = #tpu.pipeline_mode<synchronous>, transform_indices = @transform_3, window_bounds = array<i64: 1, 32>}, {pipeline_mode = #tpu.pipeline_mode<synchronous>, transform_indices = @transform_4, window_bounds = array<i64: 1, 32>}, {transform_indices = @transform_5, window_bounds = array<i64: 16, 32>}]} {
    %c0 = arith.constant 0 : index
    %c0_0 = arith.constant 0 : index
    %0 = vector.load %arg1[%c0, %c0_0] : memref<16x32xf32, #tpu.memory_space<vmem>>, vector<16x32xf32>
    %1 = arith.truncf %0 : vector<16x32xf32> to vector<16x32xbf16>
    %c0_1 = arith.constant 0 : index
    %c0_2 = arith.constant 0 : index
    %2 = vector.load %arg2[%c0_1, %c0_2] : memref<32x32xbf16, #tpu.memory_space<vmem>>, vector<32x32xbf16>
    %cst = arith.constant dense<0.000000e+00> : vector<16x32xf32>
    %3 = tpu.matmul %1, %2, %cst {dimension_numbers = #tpu.dot_dimension_numbers<[1], [0], [0], [1], [0, 0, 1, 1], [], []>} : vector<16x32xbf16>, vector<32x32xbf16>, vector<16x32xf32> -> vector<16x32xf32>
    %c0_3 = arith.constant 0 : index
    %c0_4 = arith.constant 0 : index
    %4 = vector.load %arg3[%c0_3, %c0_4] : memref<1x32xf32, #tpu.memory_space<vmem>>, vector<1x32xf32>
    %5 = vector.broadcast %4 : vector<1x32xf32> to vector<16x32xf32>
    %6 = arith.addf %3, %5 : vector<16x32xf32>
    %cst_5 = arith.constant 5.000000e-01 : f32
    %7 = vector.broadcast %cst_5 : f32 to vector<16x32xf32>
    %8 = arith.mulf %6, %7 : vector<16x32xf32>
    %cst_6 = arith.constant 0.707106769 : f32
    %9 = vector.broadcast %cst_6 : f32 to vector<16x32xf32>
    %10 = arith.mulf %6, %9 : vector<16x32xf32>
    %11 = math.erf %10 : vector<16x32xf32>
    %cst_7 = arith.constant 1.000000e+00 : f32
    %12 = vector.broadcast %cst_7 : f32 to vector<16x32xf32>
    %13 = arith.addf %12, %11 : vector<16x32xf32>
    %14 = arith.mulf %8, %13 : vector<16x32xf32>
    %c0_8 = arith.constant 0 : index
    %c0_9 = arith.constant 0 : index
    %15 = vector.load %arg4[%c0_8, %c0_9] : memref<1x32xf32, #tpu.memory_space<vmem>>, vector<1x32xf32>
    %c0_10 = arith.constant 0 : index
    %c0_11 = arith.constant 0 : index
    %16 = vector.load %arg5[%c0_10, %c0_11] : memref<1x32xf32, #tpu.memory_space<vmem>>, vector<1x32xf32>
    %cst_12 = arith.constant dense<0.000000e+00> : vector<16xf32>
    %17 = vector.multi_reduction <add>, %14, %cst_12 [1] : vector<16x32xf32> to vector<16xf32>
    %18 = vector.shape_cast %17 : vector<16xf32> to vector<16x1xf32>
    %cst_13 = arith.constant 3.200000e+01 : f32
    %19 = vector.broadcast %cst_13 : f32 to vector<16x1xf32>
    %20 = arith.divf %18, %19 : vector<16x1xf32>
    %21 = vector.broadcast %20 : vector<16x1xf32> to vector<16x32xf32>
    %22 = arith.subf %14, %21 : vector<16x32xf32>
    %23 = vector.broadcast %20 : vector<16x1xf32> to vector<16x32xf32>
    %24 = arith.subf %14, %23 : vector<16x32xf32>
    %25 = arith.mulf %22, %24 : vector<16x32xf32>
    %cst_14 = arith.constant dense<0.000000e+00> : vector<16xf32>
    %26 = vector.multi_reduction <add>, %25, %cst_14 [1] : vector<16x32xf32> to vector<16xf32>
    %27 = vector.shape_cast %26 : vector<16xf32> to vector<16x1xf32>
    %cst_15 = arith.constant 3.100000e+01 : f32
    %28 = vector.broadcast %cst_15 : f32 to vector<16x1xf32>
    %29 = arith.divf %27, %28 : vector<16x1xf32>
    %30 = math.sqrt %29 : vector<16x1xf32>
    %cst_16 = arith.constant 9.99999997E-7 : f32
    %31 = vector.broadcast %cst_16 : f32 to vector<16x1xf32>
    %32 = arith.maximumf %30, %31 : vector<16x1xf32>
    %33 = vector.broadcast %20 : vector<16x1xf32> to vector<16x32xf32>
    %34 = arith.subf %14, %33 : vector<16x32xf32>
    %35 = vector.broadcast %32 : vector<16x1xf32> to vector<16x32xf32>
    %36 = arith.divf %34, %35 : vector<16x32xf32>
    %37 = vector.broadcast %15 : vector<1x32xf32> to vector<16x32xf32>
    %38 = arith.mulf %36, %37 : vector<16x32xf32>
    %39 = vector.broadcast %16 : vector<1x32xf32> to vector<16x32xf32>
    %40 = arith.addf %38, %39 : vector<16x32xf32>
    %c0_17 = arith.constant 0 : index
    %c0_18 = arith.constant 0 : index
    %41 = vector.load %arg6[%c0_17, %c0_18] : memref<16x32xf32, #tpu.memory_space<vmem>>, vector<16x32xf32>
    tpu.vector_store %arg6[%c0_17, %c0_18], %40 {strides = array<i32>} : memref<16x32xf32, #tpu.memory_space<vmem>>, vector<16x32xf32>,
    return
  }
  func.func @transform_0(%arg0: i32) -> (i32, i32) {
    %c0_i32 = arith.constant 0 : i32
    %c0_i32_0 = arith.constant 0 : i32
    return %arg0, %c0_i32 : i32, i32
  }
  func.func @transform_1(%arg0: i32) -> (i32, i32) {
    %c0_i32 = arith.constant 0 : i32
    %c0_i32_0 = arith.constant 0 : i32
    %c0_i32_1 = arith.constant 0 : i32
    return %c0_i32, %c0_i32_0 : i32, i32
  }
  func.func @transform_2(%arg0: i32) -> (i32, i32) {
    %c0_i32 = arith.constant 0 : i32
    %c0_i32_0 = arith.constant 0 : i32
    %c0_i32_1 = arith.constant 0 : i32
    return %c0_i32, %c0_i32_0 : i32, i32
  }
  func.func @transform_3(%arg0: i32) -> (i32, i32) {
    %c0_i32 = arith.constant 0 : i32
    %c0_i32_0 = arith.constant 0 : i32
    %c0_i32_1 = arith.constant 0 : i32
    return %c0_i32, %c0_i32_0 : i32, i32
  }
  func.func @transform_4(%arg0: i32) -> (i32, i32) {
    %c0_i32 = arith.constant 0 : i32
    %c0_i32_0 = arith.constant 0 : i32
    %c0_i32_1 = arith.constant 0 : i32
    return %c0_i32, %c0_i32_0 : i32, i32
  }
  func.func @transform_5(%arg0: i32) -> (i32, i32) {
    %c0_i32 = arith.constant 0 : i32
    %c0_i32_0 = arith.constant 0 : i32
    return %arg0, %c0_i32 : i32, i32
  }
}

</mosaic_0001>

<bundles_post_ra>
// kernel: ll_model_forward.11
= control target key start
LH: loop header
LB: loop body
LE: loop exit
PB: predicated region body
PF: predicated region fallthrough
CT: control target
= control target key end

     0   :  { %s425_s0 = inlined_call_operand.vmem [shape: f32[16,32], index: 0, kind: input, shape index: {}]   ;;  %s426_s1 = inlined_call_operand.vmem [shape: bf16[32,32], index: 1, kind: input, shape index: {}]   ;;  %s427_s2 = inlined_call_operand.vmem [shape: f32[1,32], index: 2, kind: input, shape index: {}]   ;;  %s428_s3 = inlined_call_operand.vmem [shape: f32[1,32], index: 3, kind: input, shape index: {}]   ;;  %s429_s4 = inlined_call_operand.vmem [shape: f32[1,32], index: 4, kind: input, shape index: {}]   ;;  %s430_s5 = inlined_call_operand.hbm [shape: f32[16,32], index: 5, kind: output, shape index: {}]  }
   0x1   :  { %v285_v0 = vld [vmem:[%s426_s1 + $0x8] sm:$0xff]  ;;  %v284_v1 = vld [vmem:[%s426_s1] sm:$0xff] }
   0x2   :  { %v22_v2 = vld [vmem:[%s425_s0] sm:$0xff]  ;;  %v23_v3 = vld [vmem:[%s425_s0 + $0x8] sm:$0xff]  ;;  %55 = vmatpush.bf16.msra.mxu0 %v285_v0 }
   0x3   :  { %10 = vsyncpa [#allocation3], 0  ;;  %v24_v4 = vpack.c.bf16 %v23_v3, %v22_v2  ;;  %vm45_vm0 = vcmask 261120   ;;  %v291_v5 = vld [vmem:[%s427_s2] ss:$0 sm:$0xff]  ;;  %s261_s6 = sshll.u32 %s430_s5, 4  ;;  %s262_s6 = int_to_ptr.hbm [resolvable:$true] %s261_s6 }
   0x4   :  { %s339_s7 = smov 128   ;;  %s340_s8 = smov 8  }
   0x6   :  { %56 = vmatpush.bf16.msra.mxu0 %v284_v1 }
   0x9   :  { %281 = vmatmul.msk.bf16.vlgmr.msra.gmra.mxu0 %vm45_vm0, %v24_v4 }
  0x86   :  { %v58_v6 = vpop.f32.mrf.mxu0 }
  0x87   :  { %v387_v7 = vadd.f32 %v291_v5, %v58_v6 }
  0x89   :  { %v65_v8 = vmul.f32 0.70710677, %v387_v7 }
  0x8b   :  { %v67_v9 = vmul.f32 %v65_v8, %v65_v8 }
  0x8d   :  { %v68_v10 = vmin.f32 %v67_v9, 16.0 }
  0x8e   :  { %v60_v11 = vpop.f32.mrf.mxu0 }
  0x8f   :  { %v69_v12 = vmul.f32 2.1237322e-06, %v68_v10  ;;  %v390_v13 = vadd.f32 %v291_v5, %v60_v11  ;;  %v80_v14 = vmul.f32 3.8918573e-05, %v68_v10 }
  0x91   :  { %v70_v15 = vadd.f32 0.00028619796, %v69_v12  ;;  %v393_v16 = vmul.f32 0.70710677, %v390_v13  ;;  %v81_v17 = vadd.f32 0.001143296, %v80_v14 }
  0x93   :  { %v71_v18 = vmul.f32 %v70_v15, %v68_v10  ;;  %v107_v19 = vmul.f32 %v393_v16, %v393_v16  ;;  %v82_v20 = vmul.f32 %v81_v17, %v68_v10  ;;  %v63_v15 = vmul.f32 0.5, %v387_v7 }
  0x95   :  { %v108_v21 = vmin.f32 %v107_v19, 16.0  ;;  %v83_v22 = vadd.f32 0.014752088, %v82_v20  ;;  %v72_v23 = vadd.f32 0.0036580483, %v71_v18 }
  0x97   :  { %v109_v24 = vmul.f32 2.1237322e-06, %v108_v21  ;;  %v120_v25 = vmul.f32 3.8918573e-05, %v108_v21  ;;  %v84_v26 = vmul.f32 %v83_v22, %v68_v10  ;;  %v73_v30 = vmul.f32 %v72_v23, %v68_v10 }
  0x99   :  { %v110_v27 = vadd.f32 0.00028619796, %v109_v24  ;;  %v121_v28 = vadd.f32 0.001143296, %v120_v25  ;;  %v85_v29 = vadd.f32 0.112945676, %v84_v26 }
  0x9a   :  { %v74_v37 = vadd.f32 0.05243302, %v73_v30  ;;  %v64_v25 = vmul.f32 0.5, %v390_v13 }
  0x9b   :  { %v111_v31 = vmul.f32 %v110_v27, %v108_v21  ;;  %v122_v32 = vmul.f32 %v121_v28, %v108_v21  ;;  %v86_v33 = vmul.f32 %v85_v29, %v68_v10  ;;  %v336_v28 = vmov 32.0  }
  0x9c   :  { %v75_v43 = vmul.f32 %v74_v37, %v68_v10 }
  0x9d   :  { %v123_v34 = vadd.f32 0.014752088, %v122_v32  ;;  %v112_v35 = vadd.f32 0.0036580483, %v111_v31  ;;  %v87_v36 = vadd.f32 0.4994258, %v86_v33 }
  0x9e   :  { %v76_v47 = vadd.f32 0.18741608, %v75_v43  ;;  %v337_v43 = vmov 31.0  }
  0x9f   :  { %v124_v38 = vmul.f32 %v123_v34, %v108_v21  ;;  %v88_v39 = vmul.f32 %v87_v36, %v68_v10  ;;  %v113_v41 = vmul.f32 %v112_v35, %v108_v21 }
  0xa0   :  { %v77_v52 = vmul.f32 %v76_v47, %v68_v10 }
  0xa1   :  { %v125_v40 = vadd.f32 0.112945676, %v124_v38  ;;  %v89_v42 = vadd.f32 1.0, %v88_v39  ;;  %v114_v46 = vadd.f32 0.05243302, %v113_v41 }
  0xa2   :  { %v78_v57 = vadd.f32 1.1283791, %v77_v52 }
  0xa3   :  { %v126_v44 = vmul.f32 %v125_v40, %v108_v21  ;;  %294 = vrcp.f32 %v89_v42  ;;  %v115_v51 = vmul.f32 %v114_v46, %v108_v21  ;;  %v101_v56 = vand.u32 2147483648, %v89_v42 }
  0xa4   :  { %v99_v59 = vand.u32 2147483647, %v89_v42  ;;  %vm95_vm2 = vweird.f32 %v89_v42  ;;  %v79_v1 = vmul.f32 %v78_v57, %v65_v8 }
  0xa5   :  { %v127_v45 = vadd.f32 0.4994258, %v126_v44  ;;  %v116_v55 = vadd.f32 0.18741608, %v115_v51  ;;  %v102_v63 = vor.u32 1.1754944e-38, %v101_v56 }
  0xa6   :  { %vm100_vm4 = vcmp.eq.f32.partialorder %v99_v59, 8.507059e+37 }
  0xa7   :  { %v128_v48 = vmul.f32 %v127_v45, %v108_v21  ;;  %v117_v62 = vmul.f32 %v116_v55, %v108_v21 }
  0xa9   :  { %v129_v49 = vadd.f32 1.0, %v128_v48  ;;  %v295_v50 = vpop.eup %294  ;;  %v118_v9 = vadd.f32 1.1283791, %v117_v62 }
  0xaa   :  { %v91_v53 = vmul.f32 %v295_v50, %v89_v42  ;;  %vm96_vm1 = vweird.f32 %v295_v50 }
  0xab   :  { %296 = vrcp.f32 %v129_v49  ;;  %vm97_vm3 = vmor %vm95_vm2, %vm96_vm1  ;;  %v141_v6 = vand.u32 2147483648, %v129_v49  ;;  %v139_v11 = vand.u32 2147483647, %v129_v49  ;;  %vm135_vm6 = vweird.f32 %v129_v49 }
  0xac   :  { %v92_v54 = vsub.f32 1.0, %v91_v53  ;;  %v119_v8 = vmul.f32 %v118_v9, %v393_v16  ;;  %298 = vrcp.f32 %v336_v28 }
  0xad   :  { %v142_v18 = vor.u32 1.1754944e-38, %v141_v6  ;;  %vm140_vm8 = vcmp.eq.f32.partialorder %v139_v11, 8.507059e+37  ;;  %300 = vrcp.f32 %v337_v43 }
  0xae   :  { %v93_v58 = vmul.f32 %v295_v50, %v92_v54 }
  0xb0   :  { %v94_v61 = vadd.f32 %v295_v50, %v93_v58 }
  0xb1   :  { %v297_v60 = vpop.eup %296 }
  0xb2   :  { %v131_v0 = vmul.f32 %v297_v60, %v129_v49  ;;  %v98_v2 = vsel %vm97_vm3, %v295_v50, %v94_v61  ;;  %vm136_vm5 = vweird.f32 %v297_v60  ;;  %v299_v29 = vpop.eup %298 }
  0xb3   :  { %v103_v3 = vsel %vm100_vm4, %v102_v63, %v98_v2  ;;  %vm137_vm7 = vmor %vm135_vm6, %vm136_vm5  ;;  %v160_v16 = vmul.f32 32.0, %v299_v29  ;;  %vm164_vm9 = vweird.f32 %v299_v29  ;;  %v301_v44 = vpop.eup %300 }
  0xb4   :  { %v132_v4 = vsub.f32 1.0, %v131_v0  ;;  %v104_v5 = vmul.f32 %v103_v3, %v79_v1  ;;  %v179_v45 = vmul.f32 31.0, %v301_v44  ;;  %vm183_vm10 = vweird.f32 %v301_v44 }
  0xb5   :  { %v161_v30 = vsub.f32 1.0, %v160_v16 }
  0xb6   :  { %v133_v10 = vmul.f32 %v297_v60, %v132_v4  ;;  %v282_v12 = vclamps-f32 %v104_v5, 1.0  ;;  %v180_v46 = vsub.f32 1.0, %v179_v45 }
  0xb7   :  { %v162_v31 = vmul.f32 %v299_v29, %v161_v30 }
  0xb8   :  { %v134_v14 = vadd.f32 %v297_v60, %v133_v10  ;;  %v147_v17 = vadd.f32 1.0, %v282_v12  ;;  %v181_v47 = vmul.f32 %v301_v44, %v180_v46 }
  0xb9   :  { %v163_v32 = vadd.f32 %v299_v29, %v162_v31 }
  0xba   :  { %v138_v19 = vsel %vm137_vm7, %v297_v60, %v134_v14  ;;  %v149_v20 = vmul.f32 %v147_v17, %v63_v15  ;;  %v182_v48 = vadd.f32 %v301_v44, %v181_v47 }
  0xbb   :  { %v143_v21 = vsel %vm140_vm8, %v142_v18, %v138_v19  ;;  %v165_v33 = vsel %vm164_vm9, %v299_v29, %v163_v32  ;;  %v293_v29 = vld [vmem:[%s429_s4] ss:$0 sm:$0xff] }
  0xbc   :  { %v144_v22 = vmul.f32 %v143_v21, %v119_v8  ;;  %v153_v23 = vsel %vm45_vm0, %v149_v20, 0.0  ;;  %v184_v49 = vsel %vm183_vm10, %v301_v44, %v182_v48 }
  0xbd   :  { %154 = vadd.xlane.f32.xlu0 %v153_v23 }
  0xbe   :  { %v283_v24 = vclamps-f32 %v144_v22, 1.0 }
  0xc0   :  { %v148_v26 = vadd.f32 1.0, %v283_v24 }
  0xc2   :  { %v150_v27 = vmul.f32 %v148_v26, %v64_v25  ;;  %v292_v26 = vld [vmem:[%s428_s3] ss:$0 sm:$0xff]  ;;  %s338_s3 = smov [#allocation2]  }
  0xc3   :  { %s259_s29 = sshll.u32 %s338_s3, 4  ;;  %s260_s29 = int_to_ptr.vmem [resolvable:$true] %s259_s29 }
  0xc4   :  { %v156_v7 = vsel %vm45_vm0, %v150_v27, 0.0 }
  0xc5   :  { %157 = vadd.xlane.f32.xlu0 %v156_v7 }
 0x130   :  { %v155_v34 = vpop.xlane.xlu0 %154 }
 0x131   :  { %v166_v35 = vmul.f32 %v165_v33, %v155_v34 }
 0x133   :  { %v402_v36 = vsub.f32 %v149_v20, %v166_v35 }
 0x135   :  { %v170_v13 = vmul.f32 %v402_v36, %v402_v36 }
 0x137   :  { %v172_v37 = vsel %vm45_vm0, %v170_v13, 0.0 }
 0x138   :  { %173 = vadd.xlane.f32.xlu1 %v172_v37  ;;  %v158_v38 = vpop.xlane.xlu0 %157 }
 0x139   :  { %v167_v39 = vmul.f32 %v165_v33, %v158_v38 }
 0x13b   :  { %v407_v40 = vsub.f32 %v150_v27, %v167_v39 }
 0x13d   :  { %v171_v41 = vmul.f32 %v407_v40, %v407_v40 }
 0x13f   :  { %v175_v42 = vsel %vm45_vm0, %v171_v41, 0.0 }
 0x140   :  { %176 = vadd.xlane.f32.xlu1 %v175_v42 }
 0x1ab   :  { %v174_v50 = vpop.xlane.xlu1 %173 }
 0x1ac   :  { %v185_v51 = vmul.f32 %v184_v49, %v174_v50 }
 0x1ae   :  { %302 = vrsqrt.f32 %v185_v51  ;;  %vm194_vm11 = vcmp.eq.f32.partialorder %v185_v51, inf  ;;  %v197_v0 = vand.u32 2147483648, %v185_v51  ;;  %vm196_vm12 = vcmp.eq.f32.partialorder %v185_v51, 0.0 }
 0x1b3   :  { %v177_v52 = vpop.xlane.xlu1 %176 }
 0x1b4   :  { %v303_v53 = vpop.eup %302  ;;  %v186_v54 = vmul.f32 %v184_v49, %v177_v52 }
 0x1b5   :  { %v188_v55 = vmul.f32 %v303_v53, %v185_v51 }
 0x1b6   :  { %304 = vrsqrt.f32 %v186_v54  ;;  %vm206_vm13 = vcmp.eq.f32.partialorder %v186_v54, inf  ;;  %v209_v10 = vand.u32 2147483648, %v186_v54  ;;  %vm208_vm14 = vcmp.eq.f32.partialorder %v186_v54, 0.0 }
 0x1b7   :  { %v189_v56 = vmul.f32 %v303_v53, %v188_v55 }
 0x1b9   :  { %v190_v57 = vmul.f32 0.5, %v189_v56 }
 0x1bb   :  { %v191_v58 = vsub.f32 1.5, %v190_v57 }
 0x1bc   :  { %v305_v59 = vpop.eup %304 }
 0x1bd   :  { %v192_v60 = vmul.f32 %v303_v53, %v191_v58  ;;  %v200_v61 = vmul.f32 %v305_v59, %v186_v54 }
 0x1bf   :  { %v193_v62 = vmul.f32 %v192_v60, %v185_v51  ;;  %v201_v63 = vmul.f32 %v305_v59, %v200_v61 }
 0x1c1   :  { %v195_v1 = vsel %vm194_vm11, %v185_v51, %v193_v62  ;;  %v202_v2 = vmul.f32 0.5, %v201_v63 }
 0x1c2   :  { %v198_v3 = vsel %vm196_vm12, %v197_v0, %v195_v1 }
 0x1c3   :  { %v211_v4 = vmax.f32 %v198_v3, 1e-06  ;;  %v203_v5 = vsub.f32 1.5, %v202_v2 }
 0x1c5   :  { %306 = vrcp.f32 %v211_v4  ;;  %v204_v6 = vmul.f32 %v305_v59, %v203_v5  ;;  %v224_v8 = vand.u32 2147483648, %v211_v4  ;;  %v222_v20 = vand.u32 2147483647, %v211_v4 }
 0x1c6   :  { %vm218_vm1 = vweird.f32 %v211_v4 }
 0x1c7   :  { %v205_v9 = vmul.f32 %v204_v6, %v186_v54  ;;  %v225_v23 = vor.u32 1.1754944e-38, %v224_v8  ;;  %vm223_vm3 = vcmp.eq.f32.partialorder %v222_v20, 8.507059e+37 }
 0x1c9   :  { %v207_v11 = vsel %vm206_vm13, %v186_v54, %v205_v9 }
 0x1ca   :  { %v210_v12 = vsel %vm208_vm14, %v209_v10, %v207_v11 }
 0x1cb   :  { %v307_v14 = vpop.eup %306  ;;  %v212_v15 = vmax.f32 %v210_v12, 1e-06 }
 0x1cc   :  { %v214_v17 = vmul.f32 %v307_v14, %v211_v4  ;;  %vm219_vm15 = vweird.f32 %v307_v14 }
 0x1cd   :  { %308 = vrcp.f32 %v212_v15  ;;  %vm220_vm2 = vmor %vm218_vm1, %vm219_vm15  ;;  %v239_v16 = vand.u32 2147483648, %v212_v15  ;;  %v237_v31 = vand.u32 2147483647, %v212_v15  ;;  %vm233_vm5 = vweird.f32 %v212_v15 }
 0x1ce   :  { %v215_v18 = vsub.f32 1.0, %v214_v17 }
 0x1cf   :  { %v240_v35 = vor.u32 1.1754944e-38, %v239_v16  ;;  %vm238_vm7 = vcmp.eq.f32.partialorder %v237_v31, 8.507059e+37 }
 0x1d0   :  { %v216_v19 = vmul.f32 %v307_v14, %v215_v18 }
 0x1d2   :  { %v217_v21 = vadd.f32 %v307_v14, %v216_v19 }
 0x1d3   :  { %v309_v22 = vpop.eup %308 }
 0x1d4   :  { %v221_v24 = vsel %vm220_vm2, %v307_v14, %v217_v21  ;;  %v229_v25 = vmul.f32 %v309_v22, %v212_v15  ;;  %vm234_vm4 = vweird.f32 %v309_v22 }
 0x1d5   :  { %v226_v27 = vsel %vm223_vm3, %v225_v23, %v221_v24  ;;  %vm235_vm6 = vmor %vm233_vm5, %vm234_vm4 }
 0x1d6   :  { %v227_v7 = vmul.f32 %v226_v27, %v402_v36  ;;  %v230_v28 = vsub.f32 1.0, %v229_v25 }
 0x1d8   :  { %v231_v30 = vmul.f32 %v309_v22, %v230_v28  ;;  %v246_v32 = vmul.f32 %v292_v26, %v227_v7 }
 0x1da   :  { %v232_v33 = vadd.f32 %v309_v22, %v231_v30  ;;  %v251_v34 = vadd.f32 %v293_v29, %v246_v32 }
 0x1dc   :  { %v236_v13 = vsel %vm235_vm6, %v309_v22, %v232_v33  ;;  %253 = vst.msk [vmem:[#allocation2] sm:$0xff] %vm45_vm0, %v251_v34 }
 0x1dd   :  { %v241_v36 = vsel %vm238_vm7, %v240_v35, %v236_v13 }
 0x1de   :  { %v242_v37 = vmul.f32 %v241_v36, %v407_v40 }
 0x1e0   :  { %v247_v38 = vmul.f32 %v292_v26, %v242_v37 }
 0x1e2   :  { %v252_v39 = vadd.f32 %v293_v29, %v247_v38 }
 0x1e4   :  { %254 = vst.msk [vmem:[#allocation2 + $0x8] sm:$0xff] %vm45_vm0, %v252_v39 }
 0x1e5   :  { %267 = dma.vmem_to_hbm [thread:$0]  %s260_s29, 256, %s262_s6, [#allocation3], %s339_s7, %s339_s7, %s340_s8  }
 0x1e6   :  { %334 = dma.done.wait [#allocation3], 256  }
 0x1e7   :  { %335 = vsyncadd [#allocation3], 4294967040 }
 0x1e8   :  { %272 = vsyncpa [#allocation3], 1 }

// kernel: ll_model_forward.6
= control target key start
LH: loop header
LB: loop body
LE: loop exit
PB: predicated region body
PF: predicated region fallthrough
CT: control target
= control target key end

     0   :  { %vm18_vm0 = vcmask 261120   ;;  %v141_v4 = vmov 32.0   ;;  %v142_v21 = vmov 31.0   ;;  %s197_s0 = inlined_call_operand.vmem [shape: f32[16,32], index: 0, kind: input, shape index: {}]   ;;  %s198_s1 = inlined_call_operand.vmem [shape: f32[1,32], index: 1, kind: input, shape index: {}]   ;;  %s199_s2 = inlined_call_operand.vmem [shape: f32[1,32], index: 2, kind: input, shape index: {}]   ;;  %s200_s3 = inlined_call_operand.vmem [shape: f32[16,32], index: 3, kind: output, shape index: {}]  }
   0x1   :  { %v14_v0 = vld [vmem:[%s197_s0] sm:$0xff]  ;;  %v15_v2 = vld [vmem:[%s197_s0 + $0x8] sm:$0xff]  ;;  %129 = vrcp.f32 %v141_v4 }
   0x2   :  { %v19_v1 = vsel %vm18_vm0, %v14_v0, 0.0  ;;  %v22_v3 = vsel %vm18_vm0, %v15_v2, 0.0  ;;  %131 = vrcp.f32 %v142_v21  ;;  %v127_v63 = vld [vmem:[%s198_s1] ss:$0 sm:$0xff] }
   0x3   :  { %20 = vadd.xlane.f32.xlu0 %v19_v1 }
   0x7   :  { %v130_v5 = vpop.eup %129 }
   0x8   :  { %v26_v6 = vmul.f32 32.0, %v130_v5  ;;  %vm30_vm1 = vweird.f32 %v130_v5  ;;  %v132_v22 = vpop.eup %131 }
   0x9   :  { %v45_v23 = vmul.f32 31.0, %v132_v22  ;;  %vm49_vm2 = vweird.f32 %v132_v22 }
   0xa   :  { %v27_v7 = vsub.f32 1.0, %v26_v6 }
   0xb   :  { %23 = vadd.xlane.f32.xlu0 %v22_v3  ;;  %v46_v24 = vsub.f32 1.0, %v45_v23  ;;  %v128_v3 = vld [vmem:[%s199_s2] ss:$0 sm:$0xff] }
   0xc   :  { %v28_v8 = vmul.f32 %v130_v5, %v27_v7 }
   0xd   :  { %v47_v25 = vmul.f32 %v132_v22, %v46_v24 }
   0xe   :  { %v29_v9 = vadd.f32 %v130_v5, %v28_v8 }
   0xf   :  { %v48_v26 = vadd.f32 %v132_v22, %v47_v25 }
  0x10   :  { %v31_v10 = vsel %vm30_vm1, %v130_v5, %v29_v9 }
  0x11   :  { %v50_v27 = vsel %vm49_vm2, %v132_v22, %v48_v26 }
  0x76   :  { %v21_v11 = vpop.xlane.xlu0 %20 }
  0x77   :  { %v32_v12 = vmul.f32 %v31_v10, %v21_v11 }
  0x79   :  { %v171_v13 = vsub.f32 %v14_v0, %v32_v12 }
  0x7b   :  { %v36_v14 = vmul.f32 %v171_v13, %v171_v13 }
  0x7d   :  { %v38_v15 = vsel %vm18_vm0, %v36_v14, 0.0 }
  0x7e   :  { %39 = vadd.xlane.f32.xlu1 %v38_v15  ;;  %v24_v16 = vpop.xlane.xlu0 %23 }
  0x7f   :  { %v33_v17 = vmul.f32 %v31_v10, %v24_v16 }
  0x81   :  { %v176_v18 = vsub.f32 %v15_v2, %v33_v17 }
  0x83   :  { %v37_v19 = vmul.f32 %v176_v18, %v176_v18 }
  0x85   :  { %v41_v20 = vsel %vm18_vm0, %v37_v19, 0.0 }
  0x86   :  { %42 = vadd.xlane.f32.xlu1 %v41_v20 }
  0xf1   :  { %v40_v28 = vpop.xlane.xlu1 %39 }
  0xf2   :  { %v51_v29 = vmul.f32 %v50_v27, %v40_v28 }
  0xf4   :  { %133 = vrsqrt.f32 %v51_v29  ;;  %vm60_vm3 = vcmp.eq.f32.partialorder %v51_v29, inf  ;;  %v63_v42 = vand.u32 2147483648, %v51_v29  ;;  %vm62_vm4 = vcmp.eq.f32.partialorder %v51_v29, 0.0 }
  0xf9   :  { %v43_v30 = vpop.xlane.xlu1 %42 }
  0xfa   :  { %v134_v31 = vpop.eup %133  ;;  %v52_v32 = vmul.f32 %v50_v27, %v43_v30 }
  0xfb   :  { %v54_v33 = vmul.f32 %v134_v31, %v51_v29 }
  0xfc   :  { %135 = vrsqrt.f32 %v52_v32  ;;  %vm72_vm5 = vcmp.eq.f32.partialorder %v52_v32, inf  ;;  %v75_v50 = vand.u32 2147483648, %v52_v32  ;;  %vm74_vm6 = vcmp.eq.f32.partialorder %v52_v32, 0.0 }
  0xfd   :  { %v55_v34 = vmul.f32 %v134_v31, %v54_v33 }
  0xff   :  { %v56_v35 = vmul.f32 0.5, %v55_v34 }
 0x101   :  { %v57_v36 = vsub.f32 1.5, %v56_v35 }
 0x102   :  { %v136_v37 = vpop.eup %135 }
 0x103   :  { %v58_v38 = vmul.f32 %v134_v31, %v57_v36  ;;  %v66_v39 = vmul.f32 %v136_v37, %v52_v32 }
 0x105   :  { %v59_v40 = vmul.f32 %v58_v38, %v51_v29  ;;  %v67_v41 = vmul.f32 %v136_v37, %v66_v39 }
 0x107   :  { %v61_v43 = vsel %vm60_vm3, %v51_v29, %v59_v40  ;;  %v68_v44 = vmul.f32 0.5, %v67_v41 }
 0x108   :  { %v64_v45 = vsel %vm62_vm4, %v63_v42, %v61_v43 }
 0x109   :  { %v77_v46 = vmax.f32 %v64_v45, 1e-06  ;;  %v69_v47 = vsub.f32 1.5, %v68_v44 }
 0x10b   :  { %137 = vrcp.f32 %v77_v46  ;;  %v70_v48 = vmul.f32 %v136_v37, %v69_v47  ;;  %v90_v57 = vand.u32 2147483648, %v77_v46  ;;  %v88_v59 = vand.u32 2147483647, %v77_v46 }
 0x10c   :  { %vm84_vm8 = vweird.f32 %v77_v46 }
 0x10d   :  { %v71_v49 = vmul.f32 %v70_v48, %v52_v32  ;;  %v91_v61 = vor.u32 1.1754944e-38, %v90_v57  ;;  %vm89_vm10 = vcmp.eq.f32.partialorder %v88_v59, 8.507059e+37 }
 0x10f   :  { %v73_v51 = vsel %vm72_vm5, %v52_v32, %v71_v49 }
 0x110   :  { %v76_v53 = vsel %vm74_vm6, %v75_v50, %v73_v51 }
 0x111   :  { %v138_v52 = vpop.eup %137  ;;  %v78_v55 = vmax.f32 %v76_v53, 1e-06 }
 0x112   :  { %v80_v54 = vmul.f32 %v138_v52, %v77_v46  ;;  %vm85_vm7 = vweird.f32 %v138_v52 }
 0x113   :  { %139 = vrcp.f32 %v78_v55  ;;  %vm86_vm9 = vmor %vm84_vm8, %vm85_vm7  ;;  %v105_v7 = vand.u32 2147483648, %v78_v55  ;;  %v103_v9 = vand.u32 2147483647, %v78_v55  ;;  %vm99_vm12 = vweird.f32 %v78_v55 }
 0x114   :  { %v81_v56 = vsub.f32 1.0, %v80_v54 }
 0x115   :  { %v106_v12 = vor.u32 1.1754944e-38, %v105_v7  ;;  %vm104_vm14 = vcmp.eq.f32.partialorder %v103_v9, 8.507059e+37 }
 0x116   :  { %v82_v58 = vmul.f32 %v138_v52, %v81_v56 }
 0x118   :  { %v83_v60 = vadd.f32 %v138_v52, %v82_v58 }
 0x119   :  { %v140_v62 = vpop.eup %139 }
 0x11a   :  { %v87_v0 = vsel %vm86_vm9, %v138_v52, %v83_v60  ;;  %v95_v2 = vmul.f32 %v140_v62, %v78_v55  ;;  %vm100_vm11 = vweird.f32 %v140_v62 }
 0x11b   :  { %v92_v1 = vsel %vm89_vm10, %v91_v61, %v87_v0  ;;  %vm101_vm13 = vmor %vm99_vm12, %vm100_vm11 }
 0x11c   :  { %v93_v4 = vmul.f32 %v92_v1, %v171_v13  ;;  %v96_v5 = vsub.f32 1.0, %v95_v2 }
 0x11e   :  { %v112_v6 = vmul.f32 %v127_v63, %v93_v4  ;;  %v97_v8 = vmul.f32 %v140_v62, %v96_v5 }
 0x120   :  { %v117_v10 = vadd.f32 %v128_v3, %v112_v6  ;;  %v98_v11 = vadd.f32 %v140_v62, %v97_v8 }
 0x122   :  { %119 = vst.msk [vmem:[%s200_s3] sm:$0xff] %vm18_vm0, %v117_v10  ;;  %v102_v14 = vsel %vm101_vm13, %v140_v62, %v98_v11 }
 0x123   :  { %v107_v15 = vsel %vm104_vm14, %v106_v12, %v102_v14 }
 0x124   :  { %v108_v13 = vmul.f32 %v107_v15, %v176_v18 }
 0x126   :  { %v113_v16 = vmul.f32 %v127_v63, %v108_v13 }
 0x128   :  { %v118_v17 = vadd.f32 %v128_v3, %v113_v16 }
 0x12a   :  { %120 = vst.msk [vmem:[%s200_s3 + $0x8] sm:$0xff] %vm18_vm0, %v118_v17 }

// kernel: ll_model_forward.7
= control target key start
LH: loop header
LB: loop body
LE: loop exit
PB: predicated region body
PF: predicated region fallthrough
CT: control target
= control target key end

     0   :  { %s769_s21 = smov 0   ;;  %s771_s22 = smov 0   ;;  %s858_s0 = inlined_call_operand.vmem [shape: f32[2,8,32], index: 0, kind: input, shape index: {}]   ;;  %s859_s1 = inlined_call_operand.vmem [shape: f32[2,1,8], index: 1, kind: input, shape index: {}]   ;;  %s860_s2 = inlined_call_operand.vmem [shape: bf16[4,32,24], index: 2, kind: input, shape index: {}]   ;;  %s861_s3 = inlined_call_operand.vmem [shape: bf16[4,8,32], index: 3, kind: input, shape index: {}]   ;;  %s862_s4 = inlined_call_operand.vmem [shape: f32[1,32], index: 4, kind: input, shape index: {}]   ;;  %s863_s5 = inlined_call_operand.vmem [shape: f32[1,32], index: 5, kind: input, shape index: {}]   ;;  %s864_s6 = inlined_call_operand.vmem [shape: f32[2,8,32], index: 6, kind: output, shape index: {}]  }
   0x1   :  { %s773_s23 = smov 0   ;;  %s775_s24 = smov 0  }
   0x2   :  { %s777_s25 = smov 0  }
   0x3 LB: > { %s25_s26 = sadd.s32 1, %s720_s23  ;;  %s28_s27 = sadd.s32 1, %s724_s24  ;;  %s728_s25 = sphi %s777_s25, %s16_s25   ;;  %s724_s24 = sphi %s775_s24, %s868_s24   ;;  %s720_s23 = sphi %s773_s23, %s867_s23   ;;  %s716_s22 = sphi %s771_s22, %s866_s22   ;;  %s712_s21 = sphi %s769_s21, %s865_s21  }
   0x4   : > { %p26_p0 = scmp.ge.s32.totalorder %s25_s26, 4  ;;  %p607_p1 = scmp.ge.s32.totalorder %s728_s25, 1 }
   0x5   : > { %p250_p2 = scmp.lt.s32.totalorder %s728_s25, 9 }
   0x6   : > { %s870_s26 = smov (%p26_p0, %s25_s26), 0  ;;  %s872_s27 = smov (!%p26_p0, %s28_s27), %s724_s24 }
   0x7   : > { %p251_p3 = pnand %p607_p1, %p250_p2  ;;  %p30_p4 = scmp.ge.s32.totalorder %s872_s27, 2 }
   0x8   : > { %p290_p5 = scmp.lt.s32.totalorder (!%p251_p3), %s716_s22, 1  ;;  %p297_p6 = scmp.lt.s32.totalorder (!%p251_p3), %s712_s21, 3 }
   0x9   : > { %s874_s27 = smov (%p30_p4, %s872_s27), 0  ;;  %254 = sbr.rel (%p251_p3) target bundleno = 1252 (0x4e4), region = 44 }
   0xa   : > { %p613_p7 = scmp.ne.s32.totalorder (!%p251_p3), %s712_s21, 0 }
   0xe   : > { %s876_s22 = smov (!%p290_p5, %s716_s22), 1 }
   0xf   : > { %s298_s28 = scalar_select %p297_p6, %s712_s21, 3 }
  0x10   : > { %s608_s29 = sshll.u32 %s876_s22, 3  ;;  %s296_s8 = scalar_lea.vmem %s859_s1, %s876_s22 }
  0x11   : > { %s293_s11 = scalar_lea.vmem %s858_s0, %s608_s29  ;;  %s629_s12 = sshll.u32 %s298_s28, 4  ;;  %v312_v0 = vld [vmem:[%s296_s8] sm:$0x1] }
  0x12   : > { %s301_s15 = scalar_lea.vmem %s860_s2, %s629_s12  ;;  %s611_s16 = sshll.u32 %s298_s28, 2  ;;  %v311_v1 = vld [vmem:[%s293_s11] sm:$0xff] }
  0x13   : > { %s815_s19 = scalar_lea.vmem %s861_s3, %s611_s16  ;;  %s820_s22 = scalar_lea.vmem %s864_s6, %s608_s29 }
  0x14   : > { %316 = sbr.rel (%p613_p7) target bundleno = 27 (0x1b), region = 48 }
  0x19   : > { %vm317_vm0 = vcmask 261120  }
  0x1a   : > { %318 = vst.msk [vmem:[#allocation2] sm:$0xff] %vm317_vm0, %v311_v1 }
  0x1b PF: > { %v631_v2 = vld [vmem:[%s301_s15 + $0x8] sm:$0xff]  ;;  %v630_v3 = vld [vmem:[%s301_s15] sm:$0xff]  ;;  %v319_v4 = vpack.c.bf16 %v311_v1, %v311_v1  ;;  %vm336_vm1 = vcmask 261120   ;;  %s730_s28 = smov 120   ;;  %vm360_vm2 = vcmask 64512   ;;  %v355_v10 = vperm.slane %v312_v0, 0 }
  0x1c   : > { %346 = vmatpush.bf16.msra.mxu0 %v631_v2  ;;  %s731_s29 = smov 112   ;;  %vm397_vm3 = vcmask 1043456   ;;  %v416_v26 = vld [vmem:[%s815_s19] sm:$0xf]  ;;  %p626_p8 = scmp.ne.s32.totalorder %s712_s21, 3 }
  0x1d   : > { %v421_v27 = vsel %vm397_vm3, %v416_v26, 0 }
  0x1e   : > { %430 = vmatpush.bf16.msra.mxu3 %v421_v27 }
  0x20   : > { %347 = vmatpush.bf16.msra.mxu0 %v630_v3 }
  0x21   : > { %v414_v31 = vld [vmem:[#allocation2] sm:$0xff] }
  0x23   : > { %622 = vmatmul.msk.bf16.vlgmr.msra.gmra.mxu0 %vm336_vm1, %v319_v4 }
  0xa0   : > { %v349_v5 = vpop.f32.mrf.mxu0 }
  0xa1   : > { %v353_v6 = vpack.c.bf16 %v349_v5, %v349_v5 }
  0xa3   : > { %358 = vrot.lane.b32.xlu0 %v353_v6, %s730_s28 }
  0xa8   : > { %v351_v7 = vpop.f32.mrf.mxu0 }
 0x115   : > { %v359_v8 = vpop.permute.xlu0 %358 }
 0x116   : > { %v365_v9 = vsel %vm360_vm2, %v359_v8, 0 }
 0x117   : > { %374 = vmatpush.bf16.xpose.msra.mxu1 %v365_v9 }
 0x11e   : > { %623 = vmatmul.msk.bf16.vlgmr.msra.gmra.mxu1 %vm360_vm2, %v353_v6 }
 0x19b   : > { %v376_v11 = vpop.f32.mrf.mxu1 }
 0x19c   : > { %v377_v12 = vadd.f32 %v376_v11, %v355_v10 }
 0x19e   : > { %v380_v13 = vsel %vm360_vm2, %v377_v12, -inf }
 0x19f   : > { %381 = vmax.xlane.f32.xlu0 %v380_v13 }
 0x1a3   : > { %v378_v14 = vpop.f32.mrf.mxu1 }
 0x212   : > { %v382_v15 = vpop.xlane.xlu0 %381 }
 0x213   : > { %v383_v16 = vsub.f32 %v377_v12, %v382_v15 }
 0x215   : > { %v384_v17 = vmul.f32 1.442695, %v383_v16 }
 0x217   : > { %676 = vpow2.f32 %v384_v17 }
 0x21d   : > { %v677_v18 = vpop.eup %676 }
 0x21e   : > { %v386_v19 = vsel %vm360_vm2, %v677_v18, 0.0 }
 0x21f   : > { %387 = vadd.xlane.f32.xlu1 %v386_v19 }
 0x238   : > { %392 = vrot.lane.b32.xlu1 %v353_v6, %s731_s29 }
 0x292   : > { %v388_v20 = vpop.xlane.xlu1 %387 }
 0x293   : > { %678 = vrcp.f32 %v388_v20 }
 0x299   : > { %v679_v21 = vpop.eup %678 }
 0x29a   : > { %v390_v22 = vmul.f32 %v679_v21, %v677_v18 }
 0x29c   : > { %v391_v25 = vpack.c.bf16 %v390_v22, %v390_v22 }
 0x2aa   : > { %v393_v23 = vpop.permute.xlu1 %392 }
 0x2ab   : > { %v399_v24 = vsel %vm397_vm3, %v393_v23, 0 }
 0x2ac   : > { %408 = vmatpush.bf16.msra.mxu2 %v399_v24 }
 0x2af   : > { %624 = vmatmul.msk.bf16.vlgmr.msra.gmra.mxu2 %vm360_vm2, %v391_v25 }
 0x332   : > { %v410_v28 = vpop.f32.mrf.mxu2 }
 0x333   : > { %v415_v29 = vpack.c.bf16 %v410_v28, %v410_v28 }
 0x335   : > { %625 = vmatmul.msk.bf16.vlgmr.msra.gmra.mxu3 %vm360_vm2, %v415_v29 }
 0x33a   : > { %v412_v30 = vpop.f32.mrf.mxu2 }
 0x3b8   : > { %v432_v32 = vpop.f32.mrf.mxu3 }
 0x3b9   : > { %v436_v33 = vadd.f32 %v432_v32, %v414_v31 }
 0x3bb   : > { %437 = vst.msk [vmem:[#allocation2] sm:$0xff] %vm336_vm1, %v436_v33 }
 0x3bc   : > { %441 = sbr.rel (%p626_p8) target bundleno = 1252 (0x4e4), region = 52 }
 0x3c0   : > { %v434_v34 = vpop.f32.mrf.mxu3 }
 0x3c1   : > { %v732_v37 = vmov 32.0   ;;  %v733_v49 = vmov 31.0   ;;  %v680_v13 = vld [vmem:[%s862_s4] ss:$0 sm:$0xff] }
 0x3c2   : > { %v442_v35 = vld [vmem:[#allocation2] sm:$0xff]  ;;  %682 = vrcp.f32 %v732_v37 }
 0x3c3   : > { %v445_v36 = vsel %vm336_vm1, %v442_v35, 0.0  ;;  %684 = vrcp.f32 %v733_v49  ;;  %v681_v16 = vld [vmem:[%s863_s5] ss:$0 sm:$0xff] }
 0x3c4   : > { %446 = vadd.xlane.f32.xlu0 %v445_v36 }
 0x3c8   : > { %v683_v38 = vpop.eup %682 }
 0x3c9   : > { %v449_v39 = vmul.f32 32.0, %v683_v38  ;;  %vm453_vm4 = vweird.f32 %v683_v38  ;;  %v685_v50 = vpop.eup %684 }
 0x3ca   : > { %v462_v51 = vmul.f32 31.0, %v685_v50  ;;  %vm466_vm5 = vweird.f32 %v685_v50 }
 0x3cb   : > { %v450_v40 = vsub.f32 1.0, %v449_v39 }
 0x3cc   : > { %v463_v52 = vsub.f32 1.0, %v462_v51 }
 0x3cd   : > { %v451_v41 = vmul.f32 %v683_v38, %v450_v40 }
 0x3ce   : > { %v464_v53 = vmul.f32 %v685_v50, %v463_v52 }
 0x3cf   : > { %v452_v42 = vadd.f32 %v683_v38, %v451_v41 }
 0x3d0   : > { %v465_v54 = vadd.f32 %v685_v50, %v464_v53 }
 0x3d1   : > { %v454_v43 = vsel %vm453_vm4, %v683_v38, %v452_v42 }
 0x3d2   : > { %v467_v55 = vsel %vm466_vm5, %v685_v50, %v465_v54 }
 0x437   : > { %v447_v44 = vpop.xlane.xlu0 %446 }
 0x438   : > { %v455_v45 = vmul.f32 %v454_v43, %v447_v44 }
 0x43a   : > { %v456_v46 = vsub.f32 %v442_v35, %v455_v45 }
 0x43c   : > { %v457_v47 = vmul.f32 %v456_v46, %v456_v46 }
 0x43e   : > { %v458_v48 = vsel %vm336_vm1, %v457_v47, 0.0 }
 0x43f   : > { %459 = vadd.xlane.f32.xlu0 %v458_v48 }
 0x4b2   : > { %v460_v56 = vpop.xlane.xlu0 %459 }
 0x4b3   : > { %v468_v57 = vmul.f32 %v467_v55, %v460_v56 }
 0x4b5   : > { %686 = vrsqrt.f32 %v468_v57  ;;  %vm476_vm6 = vcmp.eq.f32.partialorder %v468_v57, inf  ;;  %v479_v1 = vand.u32 2147483648, %v468_v57  ;;  %vm478_vm7 = vcmp.eq.f32.partialorder %v468_v57, 0.0 }
 0x4bb   : > { %v687_v58 = vpop.eup %686 }
 0x4bc   : > { %v470_v59 = vmul.f32 %v687_v58, %v468_v57 }
 0x4be   : > { %v471_v60 = vmul.f32 %v687_v58, %v470_v59 }
 0x4c0   : > { %v472_v61 = vmul.f32 0.5, %v471_v60 }
 0x4c2   : > { %v473_v62 = vsub.f32 1.5, %v472_v61 }
 0x4c4   : > { %v474_v63 = vmul.f32 %v687_v58, %v473_v62 }
 0x4c6   : > { %v475_v0 = vmul.f32 %v474_v63, %v468_v57 }
 0x4c8   : > { %v477_v2 = vsel %vm476_vm6, %v468_v57, %v475_v0 }
 0x4c9   : > { %v480_v3 = vsel %vm478_vm7, %v479_v1, %v477_v2 }
 0x4ca   : > { %v481_v4 = vmax.f32 %v480_v3, 1e-06 }
 0x4cc   : > { %688 = vrcp.f32 %v481_v4  ;;  %v493_v8 = vand.u32 2147483648, %v481_v4  ;;  %v491_v10 = vand.u32 2147483647, %v481_v4  ;;  %vm487_vm9 = vweird.f32 %v481_v4 }
 0x4ce   : > { %v494_v12 = vor.u32 1.1754944e-38, %v493_v8  ;;  %vm492_vm11 = vcmp.eq.f32.partialorder %v491_v10, 8.507059e+37 }
 0x4d2   : > { %v689_v5 = vpop.eup %688 }
 0x4d3   : > { %v483_v6 = vmul.f32 %v689_v5, %v481_v4  ;;  %vm488_vm8 = vweird.f32 %v689_v5 }
 0x4d4   : > { %vm489_vm10 = vmor %vm487_vm9, %vm488_vm8 }
 0x4d5   : > { %v484_v7 = vsub.f32 1.0, %v483_v6 }
 0x4d7   : > { %v485_v9 = vmul.f32 %v689_v5, %v484_v7 }
 0x4d9   : > { %v486_v11 = vadd.f32 %v689_v5, %v485_v9 }
 0x4db   : > { %v490_v14 = vsel %vm489_vm10, %v689_v5, %v486_v11 }
 0x4dc   : > { %v495_v15 = vsel %vm492_vm11, %v494_v12, %v490_v14 }
 0x4dd   : > { %v496_v17 = vmul.f32 %v495_v15, %v456_v46 }
 0x4df   : > { %v500_v18 = vmul.f32 %v680_v13, %v496_v17 }
 0x4e1   : > { %v504_v19 = vadd.f32 %v681_v16, %v500_v18 }
 0x4e3   : > { %505 = vst.msk [vmem:[%s820_s22] sm:$0xff] %vm336_vm1, %v504_v19 }
 0x4e4 PF: > { %s16_s25 = sadd.s32 1, %s728_s25   ;;  %s865_s21 = smov %s720_s23 }
 0x4e5   : > { %p13_p9 = scmp.ge.s32.totalorder %s16_s25, 10   ;;  %s866_s22 = smov %s724_s24 }
 0x4e6   : > { %s867_s23 = smov %s870_s26  ;;  %s868_s24 = smov %s874_s27 }
 0x4e7   :  { %15 = sbr.rel (!%p13_p9) target bundleno = 3 (0x3), region = 91 }

// kernel: ll_model_forward.8
= control target key start
LH: loop header
LB: loop body
LE: loop exit
PB: predicated region body
PF: predicated region fallthrough
CT: control target
= control target key end

     0   :  { %vm33_vm0 = vcmask 261120   ;;  %vm198_vm9 = vcmask 523264   ;;  %s518_s1 = inlined_call_operand.vmem [shape: bf16[32,64], index: 1, kind: input, shape index: {}]   ;;  %s519_s0 = inlined_call_operand.vmem [shape: f32[16,32], index: 0, kind: input, shape index: {}]   ;;  %s520_s2 = inlined_call_operand.vmem [shape: f32[1,64], index: 2, kind: input, shape index: {}]   ;;  %s521_s3 = inlined_call_operand.vmem [shape: bf16[64,32], index: 3, kind: input, shape index: {}]   ;;  %s522_s4 = inlined_call_operand.vmem [shape: f32[1,32], index: 4, kind: input, shape index: {}]   ;;  %s523_s5 = inlined_call_operand.vmem [shape: f32[1,32], index: 5, kind: input, shape index: {}]   ;;  %s524_s6 = inlined_call_operand.vmem [shape: f32[1,32], index: 6, kind: input, shape index: {}]   ;;  %s525_s7 = inlined_call_operand.vmem [shape: f32[16,32], index: 7, kind: output, shape index: {}]  }
   0x1   :  { %v368_v0 = vld [vmem:[%s518_s1 + $0x8] sm:$0xff]  ;;  %v27_v1 = vld [vmem:[%s519_s0] sm:$0xff]  ;;  %v372_v24 = vld [vmem:[%s521_s3 + $0x18] sm:$0xff] }
   0x2   :  { %v28_v2 = vld [vmem:[%s519_s0 + $0x8] sm:$0xff]  ;;  %34 = vst.msk [vmem:[#allocation2] sm:$0xff] %vm33_vm0, %v27_v1  ;;  %67 = vmatpush.bf16.msra.mxu0 %v368_v0  ;;  %v367_v3 = vld [vmem:[%s518_s1] sm:$0xff]  ;;  %206 = vmatpush.bf16.msra.mxu1 %v372_v24  ;;  %v371_v32 = vld [vmem:[%s521_s3 + $0x10] sm:$0xff] }
   0x3   :  { %35 = vst.msk [vmem:[#allocation2 + $0x8] sm:$0xff] %vm33_vm0, %v28_v2  ;;  %v36_v4 = vpack.c.bf16 %v28_v2, %v27_v1  ;;  %v375_v5 = vld [vmem:[%s520_s2] ss:$0 sm:$0xff]  ;;  %v370_v40 = vld [vmem:[%s521_s3 + $0x8] sm:$0xff] }
   0x4   :  { %v369_v46 = vld [vmem:[%s521_s3] sm:$0xff] }
   0x6   :  { %68 = vmatpush.bf16.msra.mxu0 %v367_v3  ;;  %207 = vmatpush.bf16.msra.mxu1 %v371_v32 }
   0x9   :  { %347 = vmatmul.msk.bf16.vlgmr.msra.gmra.mxu0 %vm33_vm0, %v36_v4  ;;  %v163_v32 = vld [vmem:[#allocation2] sm:$0xff] }
   0xa   :  { %208 = vmatpush.bf16.msra.mxu1 %v370_v40 }
   0xe   :  { %209 = vmatpush.bf16.msra.mxu1 %v369_v46 }
  0x86   :  { %v70_v6 = vpop.f32.mrf.mxu0 }
  0x87   :  { %v455_v7 = vadd.f32 %v375_v5, %v70_v6 }
  0x89   :  { %v458_v8 = vmul.f32 0.70710677, %v455_v7 }
  0x8b   :  { %v79_v9 = vmul.f32 %v458_v8, %v458_v8 }
  0x8d   :  { %v80_v10 = vmin.f32 %v79_v9, 16.0 }
  0x8e   :  { %v72_v11 = vpop.f32.mrf.mxu0 }
  0x8f   :  { %v81_v12 = vmul.f32 2.1237322e-06, %v80_v10  ;;  %v92_v13 = vmul.f32 3.8918573e-05, %v80_v10  ;;  %v462_v14 = vadd.f32 %v375_v5, %v72_v11 }
  0x91   :  { %v82_v15 = vadd.f32 0.00028619796, %v81_v12  ;;  %v93_v16 = vadd.f32 0.001143296, %v92_v13  ;;  %v465_v17 = vmul.f32 0.70710677, %v462_v14 }
  0x93   :  { %v94_v18 = vmul.f32 %v93_v16, %v80_v10  ;;  %v119_v19 = vmul.f32 %v465_v17, %v465_v17  ;;  %v83_v20 = vmul.f32 %v82_v15, %v80_v10 }
  0x95   :  { %v95_v21 = vadd.f32 0.014752088, %v94_v18  ;;  %v120_v22 = vmin.f32 %v119_v19, 16.0  ;;  %v84_v27 = vadd.f32 0.0036580483, %v83_v20 }
  0x97   :  { %v96_v23 = vmul.f32 %v95_v21, %v80_v10  ;;  %v121_v25 = vmul.f32 2.1237322e-06, %v120_v22  ;;  %v132_v26 = vmul.f32 3.8918573e-05, %v120_v22  ;;  %v85_v35 = vmul.f32 %v84_v27, %v80_v10 }
  0x98   :  { %v76_v27 = vmul.f32 0.5, %v462_v14 }
  0x99   :  { %v97_v28 = vadd.f32 0.112945676, %v96_v23  ;;  %v122_v29 = vadd.f32 0.00028619796, %v121_v25  ;;  %v133_v30 = vadd.f32 0.001143296, %v132_v26 }
  0x9a   :  { %v86_v42 = vadd.f32 0.05243302, %v85_v35  ;;  %v75_v26 = vmul.f32 0.5, %v455_v7  ;;  %v376_v35 = vld [vmem:[%s522_s4] ss:$0 sm:$0xff] }
  0x9b   :  { %v98_v31 = vmul.f32 %v97_v28, %v80_v10  ;;  %v123_v33 = vmul.f32 %v122_v29, %v120_v22  ;;  %v134_v34 = vmul.f32 %v133_v30, %v120_v22 }
  0x9c   :  { %v87_v48 = vmul.f32 %v86_v42, %v80_v10  ;;  %v395_v42 = vmov 32.0  }
  0x9d   :  { %v99_v36 = vadd.f32 0.4994258, %v98_v31  ;;  %v124_v37 = vadd.f32 0.0036580483, %v123_v33  ;;  %v135_v38 = vadd.f32 0.014752088, %v134_v34 }
  0x9e   :  { %v88_v53 = vadd.f32 0.18741608, %v87_v48 }
  0x9f   :  { %v100_v39 = vmul.f32 %v99_v36, %v80_v10  ;;  %v136_v41 = vmul.f32 %v135_v38, %v120_v22  ;;  %v125_v44 = vmul.f32 %v124_v37, %v120_v22 }
  0xa0   :  { %v89_v58 = vmul.f32 %v88_v53, %v80_v10 }
  0xa1   :  { %v101_v43 = vadd.f32 1.0, %v100_v39  ;;  %v137_v45 = vadd.f32 0.112945676, %v136_v41  ;;  %v126_v49 = vadd.f32 0.05243302, %v125_v44 }
  0xa2   :  { %v90_v0 = vadd.f32 1.1283791, %v89_v58 }
  0xa3   :  { %379 = vrcp.f32 %v101_v43  ;;  %v138_v47 = vmul.f32 %v137_v45, %v120_v22  ;;  %v127_v55 = vmul.f32 %v126_v49, %v120_v22  ;;  %v113_v60 = vand.u32 2147483648, %v101_v43 }
  0xa4   :  { %v111_v62 = vand.u32 2147483647, %v101_v43  ;;  %vm107_vm2 = vweird.f32 %v101_v43  ;;  %v91_v9 = vmul.f32 %v90_v0, %v458_v8 }
  0xa5   :  { %v139_v50 = vadd.f32 0.4994258, %v138_v47  ;;  %v128_v61 = vadd.f32 0.18741608, %v127_v55  ;;  %v114_v3 = vor.u32 1.1754944e-38, %v113_v60 }
  0xa6   :  { %vm112_vm4 = vcmp.eq.f32.partialorder %v111_v62, 8.507059e+37 }
  0xa7   :  { %v140_v51 = vmul.f32 %v139_v50, %v120_v22  ;;  %v129_v4 = vmul.f32 %v128_v61, %v120_v22 }
  0xa9   :  { %v380_v52 = vpop.eup %379  ;;  %v141_v56 = vadd.f32 1.0, %v140_v51  ;;  %v130_v10 = vadd.f32 1.1283791, %v129_v4 }
  0xaa   :  { %v103_v54 = vmul.f32 %v380_v52, %v101_v43  ;;  %vm108_vm1 = vweird.f32 %v380_v52 }
  0xab   :  { %381 = vrcp.f32 %v141_v56  ;;  %vm109_vm3 = vmor %vm107_vm2, %vm108_vm1  ;;  %v153_v12 = vand.u32 2147483648, %v141_v56  ;;  %v151_v16 = vand.u32 2147483647, %v141_v56  ;;  %vm147_vm6 = vweird.f32 %v141_v56 }
  0xac   :  { %v104_v57 = vsub.f32 1.0, %v103_v54  ;;  %v131_v21 = vmul.f32 %v130_v10, %v465_v17  ;;  %v164_v17 = vld [vmem:[#allocation2 + $0x8] sm:$0xff]  ;;  %383 = vrcp.f32 %v395_v42 }
  0xad   :  { %v154_v19 = vor.u32 1.1754944e-38, %v153_v12  ;;  %vm152_vm8 = vcmp.eq.f32.partialorder %v151_v16, 8.507059e+37 }
  0xae   :  { %v105_v59 = vmul.f32 %v380_v52, %v104_v57 }
  0xb0   :  { %v106_v63 = vadd.f32 %v380_v52, %v105_v59  ;;  %v396_v59 = vmov 31.0  }
  0xb1   :  { %v382_v1 = vpop.eup %381  ;;  %385 = vrcp.f32 %v396_v59 }
  0xb2   :  { %v110_v2 = vsel %vm109_vm3, %v380_v52, %v106_v63  ;;  %v143_v5 = vmul.f32 %v382_v1, %v141_v56  ;;  %vm148_vm5 = vweird.f32 %v382_v1  ;;  %v384_v43 = vpop.eup %383 }
  0xb3   :  { %v115_v6 = vsel %vm112_vm4, %v114_v3, %v110_v2  ;;  %vm149_vm7 = vmor %vm147_vm6, %vm148_vm5  ;;  %v240_v44 = vmul.f32 32.0, %v384_v43  ;;  %vm244_vm10 = vweird.f32 %v384_v43 }
  0xb4   :  { %v144_v11 = vsub.f32 1.0, %v143_v5  ;;  %v116_v13 = vmul.f32 %v115_v6, %v91_v9 }
  0xb5   :  { %v241_v45 = vsub.f32 1.0, %v240_v44 }
  0xb6   :  { %v145_v15 = vmul.f32 %v382_v1, %v144_v11  ;;  %v348_v20 = vclamps-f32 %v116_v13, 1.0 }
  0xb7   :  { %v242_v46 = vmul.f32 %v384_v43, %v241_v45  ;;  %v386_v60 = vpop.eup %385 }
  0xb8   :  { %v146_v18 = vadd.f32 %v382_v1, %v145_v15  ;;  %v159_v25 = vadd.f32 1.0, %v348_v20  ;;  %v259_v61 = vmul.f32 31.0, %v386_v60  ;;  %vm263_vm11 = vweird.f32 %v386_v60 }
  0xb9   :  { %v243_v47 = vadd.f32 %v384_v43, %v242_v46 }
  0xba   :  { %v150_v22 = vsel %vm149_vm7, %v382_v1, %v146_v18  ;;  %v161_v29 = vmul.f32 %v159_v25, %v75_v26  ;;  %v260_v62 = vsub.f32 1.0, %v259_v61 }
  0xbb   :  { %v155_v23 = vsel %vm152_vm8, %v154_v19, %v150_v22  ;;  %v245_v48 = vsel %vm244_vm10, %v384_v43, %v243_v47 }
  0xbc   :  { %v156_v24 = vmul.f32 %v155_v23, %v131_v21  ;;  %v261_v63 = vmul.f32 %v386_v60, %v260_v62 }
  0xbe   :  { %v349_v8 = vclamps-f32 %v156_v24, 1.0  ;;  %v262_v0 = vadd.f32 %v386_v60, %v261_v63 }
  0xc0   :  { %v160_v28 = vadd.f32 1.0, %v349_v8  ;;  %v264_v1 = vsel %vm263_vm11, %v386_v60, %v262_v0 }
  0xc2   :  { %v162_v30 = vmul.f32 %v160_v28, %v76_v27 }
  0xc4   :  { %v165_v31 = vpack.c.bf16 %v162_v30, %v161_v29 }
  0xc6   :  { %366 = vmatmul.msk.bf16.vlgmr.msra.gmra.mxu1 %vm198_vm9, %v165_v31 }
 0x143   :  { %v211_v33 = vpop.f32.mrf.mxu1 }
 0x144   :  { %v216_v34 = vadd.f32 %v211_v33, %v163_v32 }
 0x146   :  { %218 = vst.msk [vmem:[#allocation2] sm:$0xff] %vm33_vm0, %v216_v34 }
 0x14b   :  { %v213_v36 = vpop.f32.mrf.mxu1 }
 0x14c   :  { %v217_v7 = vadd.f32 %v213_v36, %v164_v17 }
 0x14d   :  { %v223_v37 = vld [vmem:[#allocation2] sm:$0xff] }
 0x14e   :  { %219 = vst.msk [vmem:[#allocation2 + $0x8] sm:$0xff] %vm33_vm0, %v217_v7  ;;  %v229_v14 = vadd.f32 %v376_v35, %v223_v37 }
 0x150   :  { %v233_v38 = vsel %vm33_vm0, %v229_v14, 0.0 }
 0x151   :  { %234 = vadd.xlane.f32.xlu0 %v233_v38 }
 0x155   :  { %v224_v39 = vld [vmem:[#allocation2 + $0x8] sm:$0xff] }
 0x156   :  { %v230_v40 = vadd.f32 %v376_v35, %v224_v39 }
 0x158   :  { %v236_v41 = vsel %vm33_vm0, %v230_v40, 0.0 }
 0x159   :  { %237 = vadd.xlane.f32.xlu0 %v236_v41  ;;  %v378_v41 = vld [vmem:[%s524_s6] ss:$0 sm:$0xff] }
 0x1c4   :  { %v235_v49 = vpop.xlane.xlu0 %234 }
 0x1c5   :  { %v246_v50 = vmul.f32 %v245_v48, %v235_v49 }
 0x1c7   :  { %v492_v51 = vsub.f32 %v229_v14, %v246_v50  ;;  %v377_v14 = vld [vmem:[%s523_s5] ss:$0 sm:$0xff] }
 0x1c9   :  { %v250_v52 = vmul.f32 %v492_v51, %v492_v51 }
 0x1cb   :  { %v252_v53 = vsel %vm33_vm0, %v250_v52, 0.0 }
 0x1cc   :  { %253 = vadd.xlane.f32.xlu1 %v252_v53  ;;  %v238_v54 = vpop.xlane.xlu0 %237 }
 0x1cd   :  { %v247_v55 = vmul.f32 %v245_v48, %v238_v54 }
 0x1cf   :  { %v497_v56 = vsub.f32 %v230_v40, %v247_v55 }
 0x1d1   :  { %v251_v57 = vmul.f32 %v497_v56, %v497_v56 }
 0x1d3   :  { %v255_v58 = vsel %vm33_vm0, %v251_v57, 0.0 }
 0x1d4   :  { %256 = vadd.xlane.f32.xlu1 %v255_v58 }
 0x23f   :  { %v254_v2 = vpop.xlane.xlu1 %253 }
 0x240   :  { %v265_v3 = vmul.f32 %v264_v1, %v254_v2 }
 0x242   :  { %387 = vrsqrt.f32 %v265_v3  ;;  %vm274_vm12 = vcmp.eq.f32.partialorder %v265_v3, inf  ;;  %v277_v20 = vand.u32 2147483648, %v265_v3  ;;  %vm276_vm13 = vcmp.eq.f32.partialorder %v265_v3, 0.0 }
 0x247   :  { %v257_v4 = vpop.xlane.xlu1 %256 }
 0x248   :  { %v388_v5 = vpop.eup %387  ;;  %v266_v6 = vmul.f32 %v264_v1, %v257_v4 }
 0x249   :  { %v268_v9 = vmul.f32 %v388_v5, %v265_v3 }
 0x24a   :  { %389 = vrsqrt.f32 %v266_v6  ;;  %vm286_vm14 = vcmp.eq.f32.partialorder %v266_v6, inf  ;;  %v289_v27 = vand.u32 2147483648, %v266_v6  ;;  %vm288_vm15 = vcmp.eq.f32.partialorder %v266_v6, 0.0 }
 0x24b   :  { %v269_v11 = vmul.f32 %v388_v5, %v268_v9 }
 0x24d   :  { %v270_v10 = vmul.f32 0.5, %v269_v11 }
 0x24f   :  { %v271_v12 = vsub.f32 1.5, %v270_v10 }
 0x250   :  { %v390_v13 = vpop.eup %389 }
 0x251   :  { %v272_v15 = vmul.f32 %v388_v5, %v271_v12  ;;  %v280_v16 = vmul.f32 %v390_v13, %v266_v6 }
 0x253   :  { %v273_v18 = vmul.f32 %v272_v15, %v265_v3  ;;  %v281_v19 = vmul.f32 %v390_v13, %v280_v16 }
 0x255   :  { %v275_v21 = vsel %vm274_vm12, %v265_v3, %v273_v18  ;;  %v282_v22 = vmul.f32 0.5, %v281_v19 }
 0x256   :  { %v278_v23 = vsel %vm276_vm13, %v277_v20, %v275_v21 }
 0x257   :  { %v291_v24 = vmax.f32 %v278_v23, 1e-06  ;;  %v283_v25 = vsub.f32 1.5, %v282_v22 }
 0x259   :  { %391 = vrcp.f32 %v291_v24  ;;  %v284_v8 = vmul.f32 %v390_v13, %v283_v25  ;;  %v304_v34 = vand.u32 2147483648, %v291_v24  ;;  %v302_v35 = vand.u32 2147483647, %v291_v24 }
 0x25a   :  { %vm298_vm2 = vweird.f32 %v291_v24 }
 0x25b   :  { %v285_v26 = vmul.f32 %v284_v8, %v266_v6  ;;  %v305_v7 = vor.u32 1.1754944e-38, %v304_v34  ;;  %vm303_vm4 = vcmp.eq.f32.partialorder %v302_v35, 8.507059e+37 }
 0x25d   :  { %v287_v28 = vsel %vm286_vm14, %v266_v6, %v285_v26 }
 0x25e   :  { %v290_v30 = vsel %vm288_vm15, %v289_v27, %v287_v28 }
 0x25f   :  { %v392_v29 = vpop.eup %391  ;;  %v292_v32 = vmax.f32 %v290_v30, 1e-06 }
 0x260   :  { %v294_v31 = vmul.f32 %v392_v29, %v291_v24  ;;  %vm299_vm1 = vweird.f32 %v392_v29 }
 0x261   :  { %393 = vrcp.f32 %v292_v32  ;;  %vm300_vm3 = vmor %vm298_vm2, %vm299_vm1  ;;  %v319_v45 = vand.u32 2147483648, %v292_v32  ;;  %v317_v47 = vand.u32 2147483647, %v292_v32  ;;  %vm313_vm6 = vweird.f32 %v292_v32 }
 0x262   :  { %v295_v33 = vsub.f32 1.0, %v294_v31 }
 0x263   :  { %v320_v50 = vor.u32 1.1754944e-38, %v319_v45  ;;  %vm318_vm8 = vcmp.eq.f32.partialorder %v317_v47, 8.507059e+37 }
 0x264   :  { %v296_v17 = vmul.f32 %v392_v29, %v295_v33 }
 0x266   :  { %v297_v36 = vadd.f32 %v392_v29, %v296_v17 }
 0x267   :  { %v394_v37 = vpop.eup %393 }
 0x268   :  { %v301_v38 = vsel %vm300_vm3, %v392_v29, %v297_v36  ;;  %v309_v40 = vmul.f32 %v394_v37, %v292_v32  ;;  %vm314_vm5 = vweird.f32 %v394_v37 }
 0x269   :  { %v306_v39 = vsel %vm303_vm4, %v305_v7, %v301_v38  ;;  %vm315_vm7 = vmor %vm313_vm6, %vm314_vm5 }
 0x26a   :  { %v307_v42 = vmul.f32 %v306_v39, %v492_v51  ;;  %v310_v43 = vsub.f32 1.0, %v309_v40 }
 0x26c   :  { %v326_v44 = vmul.f32 %v377_v14, %v307_v42  ;;  %v311_v46 = vmul.f32 %v394_v37, %v310_v43 }
 0x26e   :  { %v331_v48 = vadd.f32 %v378_v41, %v326_v44  ;;  %v312_v49 = vadd.f32 %v394_v37, %v311_v46 }
 0x270   :  { %333 = vst.msk [vmem:[%s525_s7] sm:$0xff] %vm33_vm0, %v331_v48  ;;  %v316_v52 = vsel %vm315_vm7, %v394_v37, %v312_v49 }
 0x271   :  { %v321_v53 = vsel %vm318_vm8, %v320_v50, %v316_v52 }
 0x272   :  { %v322_v51 = vmul.f32 %v321_v53, %v497_v56 }
 0x274   :  { %v327_v54 = vmul.f32 %v377_v14, %v322_v51 }
 0x276   :  { %v332_v55 = vadd.f32 %v378_v41, %v327_v54 }
 0x278   :  { %334 = vst.msk [vmem:[%s525_s7 + $0x8] sm:$0xff] %vm33_vm0, %v332_v55 }

</bundles_post_ra>
